<compile_context>
chip_gen: v7x
topology: tpu7x:2x2x1
jax: 0.10.0
libtpu: 0.0.40
codegen_flags: <defaults>
</compile_context>

<pallas_src>
import functools

import jax
import jax.numpy as jnp
from jax.experimental import pallas as pl
from jax.experimental.pallas import tpu as pltpu

C_FEAT = 256          # stand-in for resnet50 fc.in_features (2048 in the real model)
EMBED_DIM = 32        # embed_dim = encoder_embedding_dim / 2
VIDEO_SAMPLES = 4     # config.video_samples
BN_EPS = 1e-5


# ------------------------------ fused kernel ---------------------------------

def _fused_kernel(x_ref, cw_ref, cb_ref, lw_ref, lb_ref, g_ref, b_ref, o_ref, feats_ref,
                  *, n_imgs, num_ch, h, w, eps):
    """Per grid step: in-kernel im2col conv3x3 + bias + ReLU + GAP for one frame.
    Last step: linear + BatchNorm1d over all frames.

    x_ref    : (1, 3, (H+2)*W, Cin) bf16  kj-shifted, spatially padded frame views
    cw_ref   : (9, Cin, C_FEAT)     bf16  conv weights, tap-major (ki*3 + kj)
    cb_ref   : (1, C_FEAT)          f32
    lw_ref   : (C_FEAT, E)          bf16
    lb_ref   : (1, E)               f32
    g_ref    : (N, 1)               f32   BN gamma expanded per row (row = b*S + s)
    b_ref    : (N, 1)               f32   BN beta  expanded per row
    o_ref    : (N, E)               f32   written on the last step only
    feats_ref: (N, C_FEAT)          f32   persistent GAP accumulator (VMEM scratch)
    """
    i = pl.program_id(0)
    hw = h * w
    cf = cw_ref.shape[-1]

    # --- 3x3 SAME conv for this frame: 9 accumulating K=Cin MXU matmuls.
    #     Tap (ki, kj) is a contiguous sublane slice starting at row ki*W (static,
    #     multiple of W -> aligned) of the kj-shifted view; no reshapes in-kernel.
    def tap_dot(ki, kj):
        lhs = x_ref[0, kj, pl.ds(ki * w, hw), :]             # (HW, Cin) bf16
        return jnp.dot(lhs, cw_ref[ki * 3 + kj],
                       preferred_element_type=jnp.float32)   # (HW, C_FEAT) f32

    acc = tap_dot(0, 0)
    for ki in range(3):
        for kj in range(3):
            if (ki, kj) == (0, 0):
                continue
            acc = acc + tap_dot(ki, kj)
    acc = jnp.maximum(acc + cb_ref[...], 0.0)                # bias + ReLU

    # --- global average pool -> row i of the persistent feature accumulator ---
    feats_ref[pl.ds(i, 1), :] = jnp.mean(acc, axis=0, keepdims=True)   # (1, C_FEAT)

    # --- finalize on the last frame: linear + BatchNorm1d(num_features=S) ---
    @pl.when(i == n_imgs - 1)
    def _():
        feats = feats_ref[...]                                            # (N, C_FEAT)
        emb = jnp.dot(feats.astype(jnp.bfloat16), lw_ref[...],
                      preferred_element_type=jnp.float32) + lb_ref[...]   # (N, E)

        # training-mode batch statistics per BN channel s; rows are ordered b*S + s,
        # so channel masks come from a row iota (no sub-tile reshape of emb needed).
        n, e = emb.shape
        denom = 1.0 / float((n_imgs // num_ch) * e)
        cid = jax.lax.broadcasted_iota(jnp.int32, (n, 1), 0) % num_ch     # (N, 1)
        mu_rows = jnp.zeros((n, 1), jnp.float32)
        inv_rows = jnp.zeros((n, 1), jnp.float32)
        for s in range(num_ch):                                           # static, S=4
            m = cid == s
            mu = jnp.sum(jnp.where(m, emb, 0.0), axis=(0, 1), keepdims=True) * denom
            var = jnp.sum(jnp.where(m, (emb - mu) ** 2, 0.0),
                          axis=(0, 1), keepdims=True) * denom
            mu_rows = jnp.where(m, mu, mu_rows)
            inv_rows = jnp.where(m, jax.lax.rsqrt(var + eps), inv_rows)

        o_ref[...] = (emb - mu_rows) * inv_rows * g_ref[...] + b_ref[...]


# -------------------------------- wrapper -------------------------------------

def visual_feature_extractor_forward(images, length, params):
    """images: (B, S*length, H, W) NCHW float32. Returns (B, S, EMBED_DIM) float32."""
    B, C, H, W = images.shape
    S = C // length
    assert S * length == C
    N = B * S
    HP = H + 2

    # Wrapper-side glue is layout only, on the raw (not 9x-expanded) frames:
    #   NCHW -> NHWC, early bf16 cast, SAME zero-pad, and three kj-shifted W-wide
    #   column windows flattened to (H+2)*W rows so that every 3x3 tap becomes a
    #   contiguous, aligned sublane slice inside the kernel.  No HBM im2col, no K pad.
    x = images.reshape(N, length, H, W).astype(jnp.bfloat16)
    x = jnp.transpose(x, (0, 2, 3, 1))                               # (N, H, W, Cin)
    xp = jnp.pad(x, ((0, 0), (1, 1), (1, 1), (0, 0)))                # (N, H+2, W+2, Cin)
    xs = jnp.stack([xp[:, :, kj:kj + W, :].reshape(N, HP * W, length)
                    for kj in range(3)], axis=1)                     # (N, 3, (H+2)*W, Cin)

    conv_w = params["conv_w"].reshape(9, length, C_FEAT).astype(jnp.bfloat16)
    lin_w = params["lin_w"].astype(jnp.bfloat16)

    # BN gamma/beta expanded to per-row vectors (row = b*S + s)
    gamma_rows = jnp.tile(params["bn_gamma"].reshape(S, 1), (B, 1))  # (N, 1)
    beta_rows = jnp.tile(params["bn_beta"].reshape(S, 1), (B, 1))    # (N, 1)

    kernel = functools.partial(_fused_kernel, n_imgs=N, num_ch=S, h=H, w=W, eps=BN_EPS)
    cost = pl.CostEstimate(
        flops=int(2 * N * H * W * (9 * length) * C_FEAT      # conv (9 taps, K=Cin)
                  + 3 * N * H * W * C_FEAT                   # bias + relu + GAP
                  + 2 * N * C_FEAT * EMBED_DIM),             # linear
        transcendentals=int(S),                              # rsqrt per BN channel
        bytes_accessed=int(xs.size * 2 + conv_w.size * 2 + C_FEAT * 4
                           + lin_w.size * 2 + EMBED_DIM * 4 + 2 * N * 4
                           + N * EMBED_DIM * 4))

    emb = pl.pallas_call(
        kernel,
        out_shape=jax.ShapeDtypeStruct((N, EMBED_DIM), jnp.float32),
        grid_spec=pltpu.PrefetchScalarGridSpec(
            num_scalar_prefetch=0,
            grid=(N,),                                       # one frame per step
            in_specs=[
                pl.BlockSpec((1, 3, HP * W, length), lambda i: (i, 0, 0, 0)),
                pl.BlockSpec((9, length, C_FEAT), lambda i: (0, 0, 0)),
                pl.BlockSpec((1, C_FEAT), lambda i: (0, 0)),
                pl.BlockSpec((C_FEAT, EMBED_DIM), lambda i: (0, 0)),
                pl.BlockSpec((1, EMBED_DIM), lambda i: (0, 0)),
                pl.BlockSpec((N, 1), lambda i: (0, 0)),
                pl.BlockSpec((N, 1), lambda i: (0, 0)),
            ],
            out_specs=pl.BlockSpec((N, EMBED_DIM), lambda i: (0, 0)),
            scratch_shapes=[pltpu.VMEM((N, C_FEAT), jnp.float32)],   # GAP accumulator
        ),
        compiler_params=pltpu.CompilerParams(
            # fused BN reads the cross-image accumulator on the last step => sequential
            dimension_semantics=("arbitrary",),
            vmem_limit_bytes=32 * 1024 * 1024,
        ),
        cost_estimate=cost,
    )(xs, conv_w, params["conv_b"], lin_w, params["lin_b"], gamma_rows, beta_rows)

    return emb.reshape(B, S, EMBED_DIM)


# ------------------------ params & pure-JAX reference --------------------------

def init_params(key, length):
    k1, k2, k3, k4 = jax.random.split(key, 4)
    conv_w = jax.random.normal(k1, (3, 3, length, C_FEAT), jnp.float32) * 0.1   # HWIO
    conv_b = jax.random.normal(k2, (1, C_FEAT), jnp.float32) * 0.01
    lin_w = jax.random.normal(k3, (C_FEAT, EMBED_DIM), jnp.float32) * (C_FEAT ** -0.5)
    lin_b = jax.random.normal(k4, (1, EMBED_DIM), jnp.float32) * 0.01
    bn_gamma = jnp.ones((1, VIDEO_SAMPLES, 1), jnp.float32)    # PyTorch BN init: weight=1
    bn_beta = jnp.zeros((1, VIDEO_SAMPLES, 1), jnp.float32)    # bias=0
    return dict(conv_w=conv_w, conv_b=conv_b, lin_w=lin_w, lin_b=lin_b,
                bn_gamma=bn_gamma, bn_beta=bn_beta)


def reference_forward(images, length, params, matmul_dtype=None):
    """Pure-JAX reference. If matmul_dtype is given, the conv / linear operands are
    cast to it with f32 accumulation, mirroring the kernel's bf16 MXU path."""
    B, C, H, W = images.shape
    S = C // length
    x = images.reshape(B * S, length, H, W).astype(jnp.float32)
    x = jnp.transpose(x, (0, 2, 3, 1))                                # NHWC
    cw, lw = params["conv_w"], params["lin_w"]
    if matmul_dtype is not None:
        x, cw, lw = x.astype(matmul_dtype), cw.astype(matmul_dtype), lw.astype(matmul_dtype)
    y = jax.lax.conv_general_dilated(
        x, cw, window_strides=(1, 1), padding="SAME",
        dimension_numbers=("NHWC", "HWIO", "NHWC"),
        preferred_element_type=jnp.float32)
    y = jnp.maximum(y + params["conv_b"][0], 0.0)
    feats = jnp.mean(y, axis=(1, 2))                                  # (B*S, C_FEAT) f32
    f = feats.astype(matmul_dtype) if matmul_dtype is not None else feats
    emb = jnp.dot(f, lw, preferred_element_type=jnp.float32) + params["lin_b"][0]
    emb = emb.reshape(B, S, EMBED_DIM)
    mean = jnp.mean(emb, axis=(0, 2), keepdims=True)
    var = jnp.mean((emb - mean) ** 2, axis=(0, 2), keepdims=True)
    return (emb - mean) * jax.lax.rsqrt(var + BN_EPS) * params["bn_gamma"] + params["bn_beta"]


# ---------------------------------- main ---------------------------------------

if __name__ == "__main__":
    key = jax.random.PRNGKey(0)
    kx, kp = jax.random.split(key)

    B, length, H, W = 2, 3, 16, 16          # images: (2, VIDEO_SAMPLES*3, 16, 16)
    images = jax.random.normal(kx, (B, VIDEO_SAMPLES * length, H, W), jnp.float32)
    params = init_params(kp, length)

    out = visual_feature_extractor_forward(images, length, params)
    out = jax.block_until_ready(out)
    assert out.shape == (B, VIDEO_SAMPLES, EMBED_DIM), out.shape

    # strict check vs a reference that applies the same bf16 operand quantization
    ref_bf16 = reference_forward(images, length, params, matmul_dtype=jnp.bfloat16)
    max_err = float(jnp.max(jnp.abs(out - ref_bf16)))
    assert max_err < 1e-3, f"mismatch vs bf16-matched reference, max_err={max_err}"

    # loose sanity check vs the full-f32 reference (gap is purely the bf16 MXU cast)
    ref_f32 = reference_forward(images, length, params)
    max_err_f32 = float(jnp.max(jnp.abs(out - ref_f32)))
    assert max_err_f32 < 1e-1, f"mismatch vs f32 reference, max_err={max_err_f32}"

    print("KERNEL_OK")
</pallas_src>

<mosaic_0001>
module attributes {stable_mosaic.version = 11 : i64} {
  func.func @_fused_kernel(%arg0: i32, %arg1: memref<1x3x288x3xbf16, #tpu.memory_space<vmem>>, %arg2: memref<9x3x256xbf16, #tpu.memory_space<vmem>>, %arg3: memref<1x256xf32, #tpu.memory_space<vmem>>, %arg4: memref<256x32xbf16, #tpu.memory_space<vmem>>, %arg5: memref<1x32xf32, #tpu.memory_space<vmem>>, %arg6: memref<8x1xf32, #tpu.memory_space<vmem>>, %arg7: memref<8x1xf32, #tpu.memory_space<vmem>>, %arg8: memref<8x32xf32, #tpu.memory_space<vmem>>, %arg9: memref<8x256xf32, #tpu.memory_space<vmem>>) attributes {dimension_semantics = [#tpu.dimension_semantics<arbitrary>], iteration_bounds = array<i64: 8>, scalar_prefetch = 0 : i64, scratch_operands = 1 : i64, tpu.core_type = #tpu.core_type<tc>, window_params = [{transform_indices = @transform_0, window_bounds = array<i64: 1, 3, 288, 3>}, {pipeline_mode = #tpu.pipeline_mode<synchronous>, transform_indices = @transform_1, window_bounds = array<i64: 9, 3, 256>}, {pipeline_mode = #tpu.pipeline_mode<synchronous>, transform_indices = @transform_2, window_bounds = array<i64: 1, 256>}, {pipeline_mode = #tpu.pipeline_mode<synchronous>, transform_indices = @transform_3, window_bounds = array<i64: 256, 32>}, {pipeline_mode = #tpu.pipeline_mode<synchronous>, transform_indices = @transform_4, window_bounds = array<i64: 1, 32>}, {pipeline_mode = #tpu.pipeline_mode<synchronous>, transform_indices = @transform_5, window_bounds = array<i64: 8, 1>}, {pipeline_mode = #tpu.pipeline_mode<synchronous>, transform_indices = @transform_6, window_bounds = array<i64: 8, 1>}, {pipeline_mode = #tpu.pipeline_mode<synchronous>, transform_indices = @transform_7, window_bounds = array<i64: 8, 32>}]} {
    %c0 = arith.constant 0 : index
    %c0_0 = arith.constant 0 : index
    %c0_1 = arith.constant 0 : index
    %c0_2 = arith.constant 0 : index
    %0 = vector.load %arg1[%c0, %c0_0, %c0_1, %c0_2] : memref<1x3x288x3xbf16, #tpu.memory_space<vmem>>, vector<1x1x256x3xbf16>
    %1 = vector.shape_cast %0 : vector<1x1x256x3xbf16> to vector<256x3xbf16>
    %c0_3 = arith.constant 0 : index
    %c0_4 = arith.constant 0 : index
    %c0_5 = arith.constant 0 : index
    %2 = vector.load %arg2[%c0_3, %c0_4, %c0_5] : memref<9x3x256xbf16, #tpu.memory_space<vmem>>, vector<1x3x256xbf16>
    %3 = vector.shape_cast %2 : vector<1x3x256xbf16> to vector<3x256xbf16>
    %cst = arith.constant dense<0.000000e+00> : vector<256x256xf32>
    %4 = tpu.matmul %1, %3, %cst {dimension_numbers = #tpu.dot_dimension_numbers<[1], [0], [0], [1], [0, 0, 1, 1], [], []>} : vector<256x3xbf16>, vector<3x256xbf16>, vector<256x256xf32> -> vector<256x256xf32>
    %c0_6 = arith.constant 0 : index
    %c1 = arith.constant 1 : index
    %c0_7 = arith.constant 0 : index
    %c0_8 = arith.constant 0 : index
    %5 = vector.load %arg1[%c0_6, %c1, %c0_7, %c0_8] : memref<1x3x288x3xbf16, #tpu.memory_space<vmem>>, vector<1x1x256x3xbf16>
    %6 = vector.shape_cast %5 : vector<1x1x256x3xbf16> to vector<256x3xbf16>
    %c1_9 = arith.constant 1 : index
    %c0_10 = arith.constant 0 : index
    %c0_11 = arith.constant 0 : index
    %7 = vector.load %arg2[%c1_9, %c0_10, %c0_11] : memref<9x3x256xbf16, #tpu.memory_space<vmem>>, vector<1x3x256xbf16>
    %8 = vector.shape_cast %7 : vector<1x3x256xbf16> to vector<3x256xbf16>
    %cst_12 = arith.constant dense<0.000000e+00> : vector<256x256xf32>
    %9 = tpu.matmul %6, %8, %cst_12 {dimension_numbers = #tpu.dot_dimension_numbers<[1], [0], [0], [1], [0, 0, 1, 1], [], []>} : vector<256x3xbf16>, vector<3x256xbf16>, vector<256x256xf32> -> vector<256x256xf32>
    %10 = arith.addf %4, %9 : vector<256x256xf32>
    %c0_13 = arith.constant 0 : index
    %c2 = arith.constant 2 : index
    %c0_14 = arith.constant 0 : index
    %c0_15 = arith.constant 0 : index
    %11 = vector.load %arg1[%c0_13, %c2, %c0_14, %c0_15] : memref<1x3x288x3xbf16, #tpu.memory_space<vmem>>, vector<1x1x256x3xbf16>
    %12 = vector.shape_cast %11 : vector<1x1x256x3xbf16> to vector<256x3xbf16>
    %c2_16 = arith.constant 2 : index
    %c0_17 = arith.constant 0 : index
    %c0_18 = arith.constant 0 : index
    %13 = vector.load %arg2[%c2_16, %c0_17, %c0_18] : memref<9x3x256xbf16, #tpu.memory_space<vmem>>, vector<1x3x256xbf16>
    %14 = vector.shape_cast %13 : vector<1x3x256xbf16> to vector<3x256xbf16>
    %cst_19 = arith.constant dense<0.000000e+00> : vector<256x256xf32>
    %15 = tpu.matmul %12, %14, %cst_19 {dimension_numbers = #tpu.dot_dimension_numbers<[1], [0], [0], [1], [0, 0, 1, 1], [], []>} : vector<256x3xbf16>, vector<3x256xbf16>, vector<256x256xf32> -> vector<256x256xf32>
    %16 = arith.addf %10, %15 : vector<256x256xf32>
    %c0_20 = arith.constant 0 : index
    %c0_21 = arith.constant 0 : index
    %c16 = arith.constant 16 : index
    %c0_22 = arith.constant 0 : index
    %17 = vector.load %arg1[%c0_20, %c0_21, %c16, %c0_22] : memref<1x3x288x3xbf16, #tpu.memory_space<vmem>>, vector<1x1x256x3xbf16>
    %18 = vector.shape_cast %17 : vector<1x1x256x3xbf16> to vector<256x3xbf16>
    %c3 = arith.constant 3 : index
    %c0_23 = arith.constant 0 : index
    %c0_24 = arith.constant 0 : index
    %19 = vector.load %arg2[%c3, %c0_23, %c0_24] : memref<9x3x256xbf16, #tpu.memory_space<vmem>>, vector<1x3x256xbf16>
    %20 = vector.shape_cast %19 : vector<1x3x256xbf16> to vector<3x256xbf16>
    %cst_25 = arith.constant dense<0.000000e+00> : vector<256x256xf32>
    %21 = tpu.matmul %18, %20, %cst_25 {dimension_numbers = #tpu.dot_dimension_numbers<[1], [0], [0], [1], [0, 0, 1, 1], [], []>} : vector<256x3xbf16>, vector<3x256xbf16>, vector<256x256xf32> -> vector<256x256xf32>
    %22 = arith.addf %16, %21 : vector<256x256xf32>
    %c0_26 = arith.constant 0 : index
    %c1_27 = arith.constant 1 : index
    %c16_28 = arith.constant 16 : index
    %c0_29 = arith.constant 0 : index
    %23 = vector.load %arg1[%c0_26, %c1_27, %c16_28, %c0_29] : memref<1x3x288x3xbf16, #tpu.memory_space<vmem>>, vector<1x1x256x3xbf16>
    %24 = vector.shape_cast %23 : vector<1x1x256x3xbf16> to vector<256x3xbf16>
    %c4 = arith.constant 4 : index
    %c0_30 = arith.constant 0 : index
    %c0_31 = arith.constant 0 : index
    %25 = vector.load %arg2[%c4, %c0_30, %c0_31] : memref<9x3x256xbf16, #tpu.memory_space<vmem>>, vector<1x3x256xbf16>
    %26 = vector.shape_cast %25 : vector<1x3x256xbf16> to vector<3x256xbf16>
    %cst_32 = arith.constant dense<0.000000e+00> : vector<256x256xf32>
    %27 = tpu.matmul %24, %26, %cst_32 {dimension_numbers = #tpu.dot_dimension_numbers<[1], [0], [0], [1], [0, 0, 1, 1], [], []>} : vector<256x3xbf16>, vector<3x256xbf16>, vector<256x256xf32> -> vector<256x256xf32>
    %28 = arith.addf %22, %27 : vector<256x256xf32>
    %c0_33 = arith.constant 0 : index
    %c2_34 = arith.constant 2 : index
    %c16_35 = arith.constant 16 : index
    %c0_36 = arith.constant 0 : index
    %29 = vector.load %arg1[%c0_33, %c2_34, %c16_35, %c0_36] : memref<1x3x288x3xbf16, #tpu.memory_space<vmem>>, vector<1x1x256x3xbf16>
    %30 = vector.shape_cast %29 : vector<1x1x256x3xbf16> to vector<256x3xbf16>
    %c5 = arith.constant 5 : index
    %c0_37 = arith.constant 0 : index
    %c0_38 = arith.constant 0 : index
    %31 = vector.load %arg2[%c5, %c0_37, %c0_38] : memref<9x3x256xbf16, #tpu.memory_space<vmem>>, vector<1x3x256xbf16>
    %32 = vector.shape_cast %31 : vector<1x3x256xbf16> to vector<3x256xbf16>
    %cst_39 = arith.constant dense<0.000000e+00> : vector<256x256xf32>
    %33 = tpu.matmul %30, %32, %cst_39 {dimension_numbers = #tpu.dot_dimension_numbers<[1], [0], [0], [1], [0, 0, 1, 1], [], []>} : vector<256x3xbf16>, vector<3x256xbf16>, vector<256x256xf32> -> vector<256x256xf32>
    %34 = arith.addf %28, %33 : vector<256x256xf32>
    %c0_40 = arith.constant 0 : index
    %c0_41 = arith.constant 0 : index
    %c32 = arith.constant 32 : index
    %c0_42 = arith.constant 0 : index
    %35 = vector.load %arg1[%c0_40, %c0_41, %c32, %c0_42] : memref<1x3x288x3xbf16, #tpu.memory_space<vmem>>, vector<1x1x256x3xbf16>
    %36 = vector.shape_cast %35 : vector<1x1x256x3xbf16> to vector<256x3xbf16>
    %c6 = arith.constant 6 : index
    %c0_43 = arith.constant 0 : index
    %c0_44 = arith.constant 0 : index
    %37 = vector.load %arg2[%c6, %c0_43, %c0_44] : memref<9x3x256xbf16, #tpu.memory_space<vmem>>, vector<1x3x256xbf16>
    %38 = vector.shape_cast %37 : vector<1x3x256xbf16> to vector<3x256xbf16>
    %cst_45 = arith.constant dense<0.000000e+00> : vector<256x256xf32>
    %39 = tpu.matmul %36, %38, %cst_45 {dimension_numbers = #tpu.dot_dimension_numbers<[1], [0], [0], [1], [0, 0, 1, 1], [], []>} : vector<256x3xbf16>, vector<3x256xbf16>, vector<256x256xf32> -> vector<256x256xf32>
    %40 = arith.addf %34, %39 : vector<256x256xf32>
    %c0_46 = arith.constant 0 : index
    %c1_47 = arith.constant 1 : index
    %c32_48 = arith.constant 32 : index
    %c0_49 = arith.constant 0 : index
    %41 = vector.load %arg1[%c0_46, %c1_47, %c32_48, %c0_49] : memref<1x3x288x3xbf16, #tpu.memory_space<vmem>>, vector<1x1x256x3xbf16>
    %42 = vector.shape_cast %41 : vector<1x1x256x3xbf16> to vector<256x3xbf16>
    %c7 = arith.constant 7 : index
    %c0_50 = arith.constant 0 : index
    %c0_51 = arith.constant 0 : index
    %43 = vector.load %arg2[%c7, %c0_50, %c0_51] : memref<9x3x256xbf16, #tpu.memory_space<vmem>>, vector<1x3x256xbf16>
    %44 = vector.shape_cast %43 : vector<1x3x256xbf16> to vector<3x256xbf16>
    %cst_52 = arith.constant dense<0.000000e+00> : vector<256x256xf32>
    %45 = tpu.matmul %42, %44, %cst_52 {dimension_numbers = #tpu.dot_dimension_numbers<[1], [0], [0], [1], [0, 0, 1, 1], [], []>} : vector<256x3xbf16>, vector<3x256xbf16>, vector<256x256xf32> -> vector<256x256xf32>
    %46 = arith.addf %40, %45 : vector<256x256xf32>
    %c0_53 = arith.constant 0 : index
    %c2_54 = arith.constant 2 : index
    %c32_55 = arith.constant 32 : index
    %c0_56 = arith.constant 0 : index
    %47 = vector.load %arg1[%c0_53, %c2_54, %c32_55, %c0_56] : memref<1x3x288x3xbf16, #tpu.memory_space<vmem>>, vector<1x1x256x3xbf16>
    %48 = vector.shape_cast %47 : vector<1x1x256x3xbf16> to vector<256x3xbf16>
    %c8 = arith.constant 8 : index
    %c0_57 = arith.constant 0 : index
    %c0_58 = arith.constant 0 : index
    %49 = vector.load %arg2[%c8, %c0_57, %c0_58] : memref<9x3x256xbf16, #tpu.memory_space<vmem>>, vector<1x3x256xbf16>
    %50 = vector.shape_cast %49 : vector<1x3x256xbf16> to vector<3x256xbf16>
    %cst_59 = arith.constant dense<0.000000e+00> : vector<256x256xf32>
    %51 = tpu.matmul %48, %50, %cst_59 {dimension_numbers = #tpu.dot_dimension_numbers<[1], [0], [0], [1], [0, 0, 1, 1], [], []>} : vector<256x3xbf16>, vector<3x256xbf16>, vector<256x256xf32> -> vector<256x256xf32>
    %52 = arith.addf %46, %51 : vector<256x256xf32>
    %c0_60 = arith.constant 0 : index
    %c0_61 = arith.constant 0 : index
    %53 = vector.load %arg3[%c0_60, %c0_61] : memref<1x256xf32, #tpu.memory_space<vmem>>, vector<1x256xf32>
    %54 = vector.broadcast %53 : vector<1x256xf32> to vector<256x256xf32>
    %55 = arith.addf %52, %54 : vector<256x256xf32>
    %cst_62 = arith.constant 0.000000e+00 : f32
    %56 = vector.broadcast %cst_62 : f32 to vector<256x256xf32>
    %57 = arith.maximumf %55, %56 : vector<256x256xf32>
    %cst_63 = arith.constant dense<0.000000e+00> : vector<256xf32>
    %58 = vector.multi_reduction <add>, %57, %cst_63 [0] : vector<256x256xf32> to vector<256xf32>
    %59 = vector.shape_cast %58 : vector<256xf32> to vector<1x256xf32>
    %cst_64 = arith.constant 2.560000e+02 : f32
    %60 = vector.broadcast %cst_64 : f32 to vector<1x256xf32>
    %61 = arith.divf %59, %60 : vector<1x256xf32>
    %62 = arith.index_cast %arg0 : i32 to index
    %c0_65 = arith.constant 0 : index
    %63 = vector.load %arg9[%62, %c0_65] : memref<8x256xf32, #tpu.memory_space<vmem>>, vector<1x256xf32>
    tpu.vector_store %arg9[%62, %c0_65], %61 {strides = array<i32>} : memref<8x256xf32, #tpu.memory_space<vmem>>, vector<1x256xf32>,
    %c7_i32 = arith.constant 7 : i32
    %64 = arith.cmpi eq, %arg0, %c7_i32 : i32
    %65 = arith.extui %64 : i1 to i32
    %c0_i32 = arith.constant 0 : i32
    %66 = arith.cmpi ne, %65, %c0_i32 : i32
    scf.if %66 {
      %c0_66 = arith.constant 0 : index
      %c0_67 = arith.constant 0 : index
      %67 = vector.load %arg9[%c0_66, %c0_67] : memref<8x256xf32, #tpu.memory_space<vmem>>, vector<8x256xf32>
      %68 = arith.truncf %67 : vector<8x256xf32> to vector<8x256xbf16>
      %c0_68 = arith.constant 0 : index
      %c0_69 = arith.constant 0 : index
      %69 = vector.load %arg4[%c0_68, %c0_69] : memref<256x32xbf16, #tpu.memory_space<vmem>>, vector<256x32xbf16>
      %cst_70 = arith.constant dense<0.000000e+00> : vector<8x32xf32>
      %70 = tpu.matmul %68, %69, %cst_70 {dimension_numbers = #tpu.dot_dimension_numbers<[1], [0], [0], [1], [0, 0, 1, 1], [], []>} : vector<8x256xbf16>, vector<256x32xbf16>, vector<8x32xf32> -> vector<8x32xf32>
      %c0_71 = arith.constant 0 : index
      %c0_72 = arith.constant 0 : index
      %71 = vector.load %arg5[%c0_71, %c0_72] : memref<1x32xf32, #tpu.memory_space<vmem>>, vector<1x32xf32>
      %72 = vector.broadcast %71 : vector<1x32xf32> to vector<8x32xf32>
      %73 = arith.addf %70, %72 : vector<8x32xf32>
      %74 = tpu.iota {dimensions = array<i32: 0>} : vector<8x1xi32>
      %c4_i32 = arith.constant 4 : i32
      %c0_i32_73 = arith.constant 0 : i32
      %75 = arith.cmpi eq, %c4_i32, %c0_i32_73 : i32
      %c1_i32 = arith.constant 1 : i32
      %76 = arith.select %75, %c1_i32, %c4_i32 : i32
      %77 = vector.broadcast %76 : i32 to vector<8x1xi32>
      %78 = arith.remsi %74, %77 : vector<8x1xi32>
      %c0_i32_74 = arith.constant 0 : i32
      %79 = vector.broadcast %c0_i32_74 : i32 to vector<8x1xi32>
      %80 = arith.cmpi ne, %78, %79 : vector<8x1xi32>
      %c0_i32_75 = arith.constant 0 : i32
      %81 = vector.broadcast %c0_i32_75 : i32 to vector<8x1xi32>
      %82 = arith.cmpi slt, %78, %81 : vector<8x1xi32>
      %c0_i32_76 = arith.constant 0 : i32
      %83 = arith.cmpi slt, %76, %c0_i32_76 : i32
      %84 = vector.broadcast %83 : i1 to vector<8x1xi1>
      %85 = vector.broadcast %84 : vector<8x1xi1> to vector<8x1xi1>
      %86 = arith.xori %82, %85 : vector<8x1xi1>
      %87 = arith.andi %86, %80 : vector<8x1xi1>
      %88 = vector.broadcast %76 : i32 to vector<8x1xi32>
      %89 = arith.addi %78, %88 : vector<8x1xi32>
      %90 = arith.select %87, %89, %78 : vector<8x1xi1>, vector<8x1xi32>
      %cst_77 = arith.constant 0.000000e+00 : f32
      %91 = vector.broadcast %cst_77 : f32 to vector<8x1xf32>
      %cst_78 = arith.constant 0.000000e+00 : f32
      %92 = vector.broadcast %cst_78 : f32 to vector<8x1xf32>
      %c0_i32_79 = arith.constant 0 : i32
      %93 = vector.broadcast %c0_i32_79 : i32 to vector<8x1xi32>
      %94 = arith.cmpi eq, %90, %93 : vector<8x1xi32>
      %cst_80 = arith.constant 0.000000e+00 : f32
      %95 = vector.shape_cast %94 : vector<8x1xi1> to vector<8x1xi1>
      %96 = vector.broadcast %95 : vector<8x1xi1> to vector<8x32xi1>
      %97 = vector.broadcast %cst_80 : f32 to vector<8x32xf32>
      %98 = arith.select %96, %73, %97 : vector<8x32xi1>, vector<8x32xf32>
      %99 = vector.shape_cast %98 : vector<8x32xf32> to vector<1x8x32xf32>
      %cst_81 = arith.constant dense<0.000000e+00> : vector<1xf32>
      %100 = vector.multi_reduction <add>, %99, %cst_81 [1, 2] : vector<1x8x32xf32> to vector<1xf32>
      %101 = vector.shape_cast %100 : vector<1xf32> to vector<1x1x1xf32>
      %102 = vector.extract %101[0, 0, 0] : f32 from vector<1x1x1xf32>
      %103 = vector.broadcast %102 : f32 to vector<1x1xf32>
      %cst_82 = arith.constant 1.562500e-02 : f32
      %104 = vector.broadcast %cst_82 : f32 to vector<1x1xf32>
      %105 = arith.mulf %103, %104 : vector<1x1xf32>
      %106 = vector.broadcast %105 : vector<1x1xf32> to vector<8x32xf32>
      %107 = arith.subf %73, %106 : vector<8x32xf32>
      %108 = arith.mulf %107, %107 : vector<8x32xf32>
      %cst_83 = arith.constant 0.000000e+00 : f32
      %109 = vector.shape_cast %94 : vector<8x1xi1> to vector<8x1xi1>
      %110 = vector.broadcast %109 : vector<8x1xi1> to vector<8x32xi1>
      %111 = vector.broadcast %cst_83 : f32 to vector<8x32xf32>
      %112 = arith.select %110, %108, %111 : vector<8x32xi1>, vector<8x32xf32>
      %113 = vector.shape_cast %112 : vector<8x32xf32> to vector<1x8x32xf32>
      %cst_84 = arith.constant dense<0.000000e+00> : vector<1xf32>
      %114 = vector.multi_reduction <add>, %113, %cst_84 [1, 2] : vector<1x8x32xf32> to vector<1xf32>
      %115 = vector.shape_cast %114 : vector<1xf32> to vector<1x1x1xf32>
      %116 = vector.extract %115[0, 0, 0] : f32 from vector<1x1x1xf32>
      %117 = vector.broadcast %116 : f32 to vector<1x1xf32>
      %cst_85 = arith.constant 1.562500e-02 : f32
      %118 = vector.broadcast %cst_85 : f32 to vector<1x1xf32>
      %119 = arith.mulf %117, %118 : vector<1x1xf32>
      %120 = vector.shape_cast %105 : vector<1x1xf32> to vector<1x1xf32>
      %121 = vector.broadcast %120 : vector<1x1xf32> to vector<8x1xf32>
      %122 = arith.select %94, %121, %91 : vector<8x1xi1>, vector<8x1xf32>
      %cst_86 = arith.constant 9.99999974E-6 : f32
      %123 = vector.broadcast %cst_86 : f32 to vector<1x1xf32>
      %124 = arith.addf %119, %123 : vector<1x1xf32>
      %125 = math.rsqrt %124 : vector<1x1xf32>
      %126 = vector.shape_cast %125 : vector<1x1xf32> to vector<1x1xf32>
      %127 = vector.broadcast %126 : vector<1x1xf32> to vector<8x1xf32>
      %128 = arith.select %94, %127, %92 : vector<8x1xi1>, vector<8x1xf32>
      %c1_i32_87 = arith.constant 1 : i32
      %129 = vector.broadcast %c1_i32_87 : i32 to vector<8x1xi32>
      %130 = arith.cmpi eq, %90, %129 : vector<8x1xi32>
      %cst_88 = arith.constant 0.000000e+00 : f32
      %131 = vector.shape_cast %130 : vector<8x1xi1> to vector<8x1xi1>
      %132 = vector.broadcast %131 : vector<8x1xi1> to vector<8x32xi1>
      %133 = vector.broadcast %cst_88 : f32 to vector<8x32xf32>
      %134 = arith.select %132, %73, %133 : vector<8x32xi1>, vector<8x32xf32>
      %135 = vector.shape_cast %134 : vector<8x32xf32> to vector<1x8x32xf32>
      %cst_89 = arith.constant dense<0.000000e+00> : vector<1xf32>
      %136 = vector.multi_reduction <add>, %135, %cst_89 [1, 2] : vector<1x8x32xf32> to vector<1xf32>
      %137 = vector.shape_cast %136 : vector<1xf32> to vector<1x1x1xf32>
      %138 = vector.extract %137[0, 0, 0] : f32 from vector<1x1x1xf32>
      %139 = vector.broadcast %138 : f32 to vector<1x1xf32>
      %cst_90 = arith.constant 1.562500e-02 : f32
      %140 = vector.broadcast %cst_90 : f32 to vector<1x1xf32>
      %141 = arith.mulf %139, %140 : vector<1x1xf32>
      %142 = vector.broadcast %141 : vector<1x1xf32> to vector<8x32xf32>
      %143 = arith.subf %73, %142 : vector<8x32xf32>
      %144 = arith.mulf %143, %143 : vector<8x32xf32>
      %cst_91 = arith.constant 0.000000e+00 : f32
      %145 = vector.shape_cast %130 : vector<8x1xi1> to vector<8x1xi1>
      %146 = vector.broadcast %145 : vector<8x1xi1> to vector<8x32xi1>
      %147 = vector.broadcast %cst_91 : f32 to vector<8x32xf32>
      %148 = arith.select %146, %144, %147 : vector<8x32xi1>, vector<8x32xf32>
      %149 = vector.shape_cast %148 : vector<8x32xf32> to vector<1x8x32xf32>
      %cst_92 = arith.constant dense<0.000000e+00> : vector<1xf32>
      %150 = vector.multi_reduction <add>, %149, %cst_92 [1, 2] : vector<1x8x32xf32> to vector<1xf32>
      %151 = vector.shape_cast %150 : vector<1xf32> to vector<1x1x1xf32>
      %152 = vector.extract %151[0, 0, 0] : f32 from vector<1x1x1xf32>
      %153 = vector.broadcast %152 : f32 to vector<1x1xf32>
      %cst_93 = arith.constant 1.562500e-02 : f32
      %154 = vector.broadcast %cst_93 : f32 to vector<1x1xf32>
      %155 = arith.mulf %153, %154 : vector<1x1xf32>
      %156 = vector.shape_cast %141 : vector<1x1xf32> to vector<1x1xf32>
      %157 = vector.broadcast %156 : vector<1x1xf32> to vector<8x1xf32>
      %158 = arith.select %130, %157, %122 : vector<8x1xi1>, vector<8x1xf32>
      %cst_94 = arith.constant 9.99999974E-6 : f32
      %159 = vector.broadcast %cst_94 : f32 to vector<1x1xf32>
      %160 = arith.addf %155, %159 : vector<1x1xf32>
      %161 = math.rsqrt %160 : vector<1x1xf32>
      %162 = vector.shape_cast %161 : vector<1x1xf32> to vector<1x1xf32>
      %163 = vector.broadcast %162 : vector<1x1xf32> to vector<8x1xf32>
      %164 = arith.select %130, %163, %128 : vector<8x1xi1>, vector<8x1xf32>
      %c2_i32 = arith.constant 2 : i32
      %165 = vector.broadcast %c2_i32 : i32 to vector<8x1xi32>
      %166 = arith.cmpi eq, %90, %165 : vector<8x1xi32>
      %cst_95 = arith.constant 0.000000e+00 : f32
      %167 = vector.shape_cast %166 : vector<8x1xi1> to vector<8x1xi1>
      %168 = vector.broadcast %167 : vector<8x1xi1> to vector<8x32xi1>
      %169 = vector.broadcast %cst_95 : f32 to vector<8x32xf32>
      %170 = arith.select %168, %73, %169 : vector<8x32xi1>, vector<8x32xf32>
      %171 = vector.shape_cast %170 : vector<8x32xf32> to vector<1x8x32xf32>
      %cst_96 = arith.constant dense<0.000000e+00> : vector<1xf32>
      %172 = vector.multi_reduction <add>, %171, %cst_96 [1, 2] : vector<1x8x32xf32> to vector<1xf32>
      %173 = vector.shape_cast %172 : vector<1xf32> to vector<1x1x1xf32>
      %174 = vector.extract %173[0, 0, 0] : f32 from vector<1x1x1xf32>
      %175 = vector.broadcast %174 : f32 to vector<1x1xf32>
      %cst_97 = arith.constant 1.562500e-02 : f32
      %176 = vector.broadcast %cst_97 : f32 to vector<1x1xf32>
      %177 = arith.mulf %175, %176 : vector<1x1xf32>
      %178 = vector.broadcast %177 : vector<1x1xf32> to vector<8x32xf32>
      %179 = arith.subf %73, %178 : vector<8x32xf32>
      %180 = arith.mulf %179, %179 : vector<8x32xf32>
      %cst_98 = arith.constant 0.000000e+00 : f32
      %181 = vector.shape_cast %166 : vector<8x1xi1> to vector<8x1xi1>
      %182 = vector.broadcast %181 : vector<8x1xi1> to vector<8x32xi1>
      %183 = vector.broadcast %cst_98 : f32 to vector<8x32xf32>
      %184 = arith.select %182, %180, %183 : vector<8x32xi1>, vector<8x32xf32>
      %185 = vector.shape_cast %184 : vector<8x32xf32> to vector<1x8x32xf32>
      %cst_99 = arith.constant dense<0.000000e+00> : vector<1xf32>
      %186 = vector.multi_reduction <add>, %185, %cst_99 [1, 2] : vector<1x8x32xf32> to vector<1xf32>
      %187 = vector.shape_cast %186 : vector<1xf32> to vector<1x1x1xf32>
      %188 = vector.extract %187[0, 0, 0] : f32 from vector<1x1x1xf32>
      %189 = vector.broadcast %188 : f32 to vector<1x1xf32>
      %cst_100 = arith.constant 1.562500e-02 : f32
      %190 = vector.broadcast %cst_100 : f32 to vector<1x1xf32>
      %191 = arith.mulf %189, %190 : vector<1x1xf32>
      %192 = vector.shape_cast %177 : vector<1x1xf32> to vector<1x1xf32>
      %193 = vector.broadcast %192 : vector<1x1xf32> to vector<8x1xf32>
      %194 = arith.select %166, %193, %158 : vector<8x1xi1>, vector<8x1xf32>
      %cst_101 = arith.constant 9.99999974E-6 : f32
      %195 = vector.broadcast %cst_101 : f32 to vector<1x1xf32>
      %196 = arith.addf %191, %195 : vector<1x1xf32>
      %197 = math.rsqrt %196 : vector<1x1xf32>
      %198 = vector.shape_cast %197 : vector<1x1xf32> to vector<1x1xf32>
      %199 = vector.broadcast %198 : vector<1x1xf32> to vector<8x1xf32>
      %200 = arith.select %166, %199, %164 : vector<8x1xi1>, vector<8x1xf32>
      %c3_i32 = arith.constant 3 : i32
      %201 = vector.broadcast %c3_i32 : i32 to vector<8x1xi32>
      %202 = arith.cmpi eq, %90, %201 : vector<8x1xi32>
      %cst_102 = arith.constant 0.000000e+00 : f32
      %203 = vector.shape_cast %202 : vector<8x1xi1> to vector<8x1xi1>
      %204 = vector.broadcast %203 : vector<8x1xi1> to vector<8x32xi1>
      %205 = vector.broadcast %cst_102 : f32 to vector<8x32xf32>
      %206 = arith.select %204, %73, %205 : vector<8x32xi1>, vector<8x32xf32>
      %207 = vector.shape_cast %206 : vector<8x32xf32> to vector<1x8x32xf32>
      %cst_103 = arith.constant dense<0.000000e+00> : vector<1xf32>
      %208 = vector.multi_reduction <add>, %207, %cst_103 [1, 2] : vector<1x8x32xf32> to vector<1xf32>
      %209 = vector.shape_cast %208 : vector<1xf32> to vector<1x1x1xf32>
      %210 = vector.extract %209[0, 0, 0] : f32 from vector<1x1x1xf32>
      %211 = vector.broadcast %210 : f32 to vector<1x1xf32>
      %cst_104 = arith.constant 1.562500e-02 : f32
      %212 = vector.broadcast %cst_104 : f32 to vector<1x1xf32>
      %213 = arith.mulf %211, %212 : vector<1x1xf32>
      %214 = vector.broadcast %213 : vector<1x1xf32> to vector<8x32xf32>
      %215 = arith.subf %73, %214 : vector<8x32xf32>
      %216 = arith.mulf %215, %215 : vector<8x32xf32>
      %cst_105 = arith.constant 0.000000e+00 : f32
      %217 = vector.shape_cast %202 : vector<8x1xi1> to vector<8x1xi1>
      %218 = vector.broadcast %217 : vector<8x1xi1> to vector<8x32xi1>
      %219 = vector.broadcast %cst_105 : f32 to vector<8x32xf32>
      %220 = arith.select %218, %216, %219 : vector<8x32xi1>, vector<8x32xf32>
      %221 = vector.shape_cast %220 : vector<8x32xf32> to vector<1x8x32xf32>
      %cst_106 = arith.constant dense<0.000000e+00> : vector<1xf32>
      %222 = vector.multi_reduction <add>, %221, %cst_106 [1, 2] : vector<1x8x32xf32> to vector<1xf32>
      %223 = vector.shape_cast %222 : vector<1xf32> to vector<1x1x1xf32>
      %224 = vector.extract %223[0, 0, 0] : f32 from vector<1x1x1xf32>
      %225 = vector.broadcast %224 : f32 to vector<1x1xf32>
      %cst_107 = arith.constant 1.562500e-02 : f32
      %226 = vector.broadcast %cst_107 : f32 to vector<1x1xf32>
      %227 = arith.mulf %225, %226 : vector<1x1xf32>
      %228 = vector.shape_cast %213 : vector<1x1xf32> to vector<1x1xf32>
      %229 = vector.broadcast %228 : vector<1x1xf32> to vector<8x1xf32>
      %230 = arith.select %202, %229, %194 : vector<8x1xi1>, vector<8x1xf32>
      %cst_108 = arith.constant 9.99999974E-6 : f32
      %231 = vector.broadcast %cst_108 : f32 to vector<1x1xf32>
      %232 = arith.addf %227, %231 : vector<1x1xf32>
      %233 = math.rsqrt %232 : vector<1x1xf32>
      %234 = vector.shape_cast %233 : vector<1x1xf32> to vector<1x1xf32>
      %235 = vector.broadcast %234 : vector<1x1xf32> to vector<8x1xf32>
      %236 = arith.select %202, %235, %200 : vector<8x1xi1>, vector<8x1xf32>
      %237 = vector.broadcast %230 : vector<8x1xf32> to vector<8x32xf32>
      %238 = arith.subf %73, %237 : vector<8x32xf32>
      %239 = vector.broadcast %236 : vector<8x1xf32> to vector<8x32xf32>
      %240 = arith.mulf %238, %239 : vector<8x32xf32>
      %c0_109 = arith.constant 0 : index
      %c0_110 = arith.constant 0 : index
      %241 = vector.load %arg6[%c0_109, %c0_110] : memref<8x1xf32, #tpu.memory_space<vmem>>, vector<8x1xf32>
      %242 = vector.broadcast %241 : vector<8x1xf32> to vector<8x32xf32>
      %243 = arith.mulf %240, %242 : vector<8x32xf32>
      %c0_111 = arith.constant 0 : index
      %c0_112 = arith.constant 0 : index
      %244 = vector.load %arg7[%c0_111, %c0_112] : memref<8x1xf32, #tpu.memory_space<vmem>>, vector<8x1xf32>
      %245 = vector.broadcast %244 : vector<8x1xf32> to vector<8x32xf32>
      %246 = arith.addf %243, %245 : vector<8x32xf32>
      %c0_113 = arith.constant 0 : index
      %c0_114 = arith.constant 0 : index
      %247 = vector.load %arg8[%c0_113, %c0_114] : memref<8x32xf32, #tpu.memory_space<vmem>>, vector<8x32xf32>
      tpu.vector_store %arg8[%c0_113, %c0_114], %246 {strides = array<i32>} : memref<8x32xf32, #tpu.memory_space<vmem>>, vector<8x32xf32>,
    } else {
    }
    return
  }
  func.func @transform_0(%arg0: i32) -> (i32, i32, i32, i32) {
    %c0_i32 = arith.constant 0 : i32
    %c0_i32_0 = arith.constant 0 : i32
    %c0_i32_1 = arith.constant 0 : i32
    %c0_i32_2 = arith.constant 0 : i32
    return %arg0, %c0_i32, %c0_i32_0, %c0_i32_1 : i32, i32, i32, i32
  }
  func.func @transform_1(%arg0: i32) -> (i32, i32, i32) {
    %c0_i32 = arith.constant 0 : i32
    %c0_i32_0 = arith.constant 0 : i32
    %c0_i32_1 = arith.constant 0 : i32
    %c0_i32_2 = arith.constant 0 : i32
    return %c0_i32, %c0_i32_0, %c0_i32_1 : i32, i32, i32
  }
  func.func @transform_2(%arg0: i32) -> (i32, i32) {
    %c0_i32 = arith.constant 0 : i32
    %c0_i32_0 = arith.constant 0 : i32
    %c0_i32_1 = arith.constant 0 : i32
    return %c0_i32, %c0_i32_0 : i32, i32
  }
  func.func @transform_3(%arg0: i32) -> (i32, i32) {
    %c0_i32 = arith.constant 0 : i32
    %c0_i32_0 = arith.constant 0 : i32
    %c0_i32_1 = arith.constant 0 : i32
    return %c0_i32, %c0_i32_0 : i32, i32
  }
  func.func @transform_4(%arg0: i32) -> (i32, i32) {
    %c0_i32 = arith.constant 0 : i32
    %c0_i32_0 = arith.constant 0 : i32
    %c0_i32_1 = arith.constant 0 : i32
    return %c0_i32, %c0_i32_0 : i32, i32
  }
  func.func @transform_5(%arg0: i32) -> (i32, i32) {
    %c0_i32 = arith.constant 0 : i32
    %c0_i32_0 = arith.constant 0 : i32
    %c0_i32_1 = arith.constant 0 : i32
    return %c0_i32, %c0_i32_0 : i32, i32
  }
  func.func @transform_6(%arg0: i32) -> (i32, i32) {
    %c0_i32 = arith.constant 0 : i32
    %c0_i32_0 = arith.constant 0 : i32
    %c0_i32_1 = arith.constant 0 : i32
    return %c0_i32, %c0_i32_0 : i32, i32
  }
  func.func @transform_7(%arg0: i32) -> (i32, i32) {
    %c0_i32 = arith.constant 0 : i32
    %c0_i32_0 = arith.constant 0 : i32
    %c0_i32_1 = arith.constant 0 : i32
    return %c0_i32, %c0_i32_0 : i32, i32
  }
}

</mosaic_0001>

<bundles_post_ra>
// kernel: tpu_custom_call.1
= control target key start
LH: loop header
LB: loop body
LE: loop exit
PB: predicated region body
PF: predicated region fallthrough
CT: control target
= control target key end

     0   :  { %12 = vsyncpa [#allocation4], 0  ;;  %s6055_s24 = smov 0   ;;  %s6879_s0 = inlined_call_operand.vmem [shape: bf16[8,3,288,3], index: 0, kind: input, shape index: {}]   ;;  %s6880_s1 = inlined_call_operand.vmem [shape: bf16[9,3,256], index: 1, kind: input, shape index: {}]   ;;  %s6881_s2 = inlined_call_operand.vmem [shape: f32[1,256], index: 2, kind: input, shape index: {}]   ;;  %s6882_s3 = inlined_call_operand.vmem [shape: bf16[256,32], index: 3, kind: input, shape index: {}]   ;;  %s6883_s4 = inlined_call_operand.vmem [shape: f32[1,32], index: 4, kind: input, shape index: {}]   ;;  %s6884_s5 = inlined_call_operand.vmem [shape: f32[8,1], index: 5, kind: input, shape index: {}]   ;;  %s6885_s6 = inlined_call_operand.vmem [shape: f32[8,1], index: 6, kind: input, shape index: {}]   ;;  %s6886_s7 = inlined_call_operand.hbm [shape: f32[8,32], index: 7, kind: output, shape index: {}]  }
   0x1 LB: > { %s6061_s25 = sadd.s32 4294967295, %s6008_s24   ;;  %p4706_p0 = scmp.ge.s32.totalorder %s6008_s24, 1  ;;  %s6008_s24 = sphi %s6055_s24, %s18_s24  }
   0x2   : > { %p233_p1 = scmp.lt.s32.totalorder %s6008_s24, 9 }
   0x4   : > { %p234_p2 = pnand %p4706_p0, %p233_p1 }
   0x5   : > { %v4757_v0 = vld.sshfl [vmem:[%s6880_s1 + $0x4] sm:$0x33 pattern:$0x76325410] (!%p234_p2)  ;;  %vm472_vm0 = vcmask (!%p234_p2), 1040384   ;;  %vm473_vm1 = vcmask (!%p234_p2), 1041408  }
   0x6   : > { %237 = sbr.rel (%p234_p2) target bundleno = 2168 (0x878), region = 48  ;;  %v422_v1 = vcombine.high (!%p234_p2), %v4757_v0, %v4757_v0  ;;  %v4956_v2 = vld.sshfl [vmem:[%s6880_s1 + $0x10] sm:$0x33 pattern:$0x76325410] (!%p234_p2)  ;;  %v6010_v3 = vmov (!%p234_p2), 65535  }
   0x7   : > { %v474_v4 = vsel (!%p234_p2), %vm472_vm0, 4294967295, %v6010_v3  ;;  %v2002_v5 = vcombine.high (!%p234_p2), %v4956_v2, %v4956_v2  ;;  %v6011_v6 = vmov (!%p234_p2), 0   ;;  %v4790_v7 = vld.sshfl [vmem:[%s6880_s1] sm:$0x33 pattern:$0x76325410] (!%p234_p2) }
   0x8   : > { %514 = vmatprep.mubr.bf16.mxu1 (!%p234_p2), %v6011_v6  ;;  %2089 = vmatprep.mubr.bf16.mxu0 (!%p234_p2), %v6011_v6  ;;  %p260_p3 = scmp.lt.s32.totalorder (!%p234_p2), %s6061_s25, 7  ;;  %v6077_v8 = vsel (!%p234_p2), %vm473_vm1, %v474_v4, 0  ;;  %v763_v9 = vcombine.high (!%p234_p2), %v4790_v7, %v4790_v7  ;;  %v5022_v10 = vld.sshfl [vmem:[%s6880_s1 + $0x14] sm:$0x33 pattern:$0x76325410] (!%p234_p2) }
   0x9   : > { %v480_v11 = vand.u32 (!%p234_p2), %v6077_v8, %v422_v1  ;;  %v6084_v12 = vand.u32 (!%p234_p2), %v2002_v5, %v6077_v8  ;;  %v477_v13 = vand.u32 (!%p234_p2), %v4757_v0, %v6077_v8  ;;  %v6088_v14 = vand.u32 (!%p234_p2), %v4956_v2, %v6077_v8  ;;  %v6094_v15 = vld.sshfl [vmem:[%s6880_s1 + $0x18] sm:$0x33 pattern:$0x76325410] (!%p234_p2)  ;;  %s4289_s30 = sshra.s32 (!%p234_p2), %s6061_s25, 3  ;;  %s4292_s8 = sand.u32 (!%p234_p2), 7, %s6061_s25 }
   0xa   : > { %v816_v16 = vand.u32 (!%p234_p2), %v763_v9, %v6077_v8  ;;  %v2436_v17 = vcombine.high (!%p234_p2), %v5022_v10, %v5022_v10  ;;  %v6100_v18 = vld.sshfl [vmem:[%s6880_s1 + $0x8] sm:$0x33 pattern:$0x76325410] (!%p234_p2)  ;;  %v2870_v19 = vcombine.high (!%p234_p2), %v6094_v15, %v6094_v15  ;;  %vm423_vm2 = vcmask (!%p234_p2), 23552   ;;  %s5229_s9 = sshll.u32 (!%p234_p2), %s4289_s30, 4 }
   0xb   : > { %482 = vmatprep.subr.bf16.mxu1 (!%p234_p2), %v480_v11  ;;  %2057 = vmatprep.subr.bf16.mxu0 (!%p234_p2), %v6084_v12  ;;  %v1134_v21 = vcombine.high (!%p234_p2), %v6100_v18, %v6100_v18  ;;  %v813_v22 = vand.u32 (!%p234_p2), %v4790_v7, %v6077_v8  ;;  %v2486_v24 = vand.u32 (!%p234_p2), %v5022_v10, %v6077_v8  ;;  %v6170_v43 = vld.sshfl [vmem:[%s6880_s1 + $0x1c] sm:$0x33 pattern:$0x76325410] (!%p234_p2)  ;;  %s4295_s10 = sadd.s32 (!%p234_p2), %s5229_s9, %s4292_s8  ;;  %p5207_p4 = scmp.ne.s32.totalorder (!%p234_p2), %s6061_s25, 7 }
   0xc   : > { %483 = vmatpush1.bf16.msra.mxu1 (!%p234_p2), %v477_v13  ;;  %2058 = vmatpush1.bf16.msra.mxu0 (!%p234_p2), %v6088_v14  ;;  %v2489_v20 = vand.u32 (!%p234_p2), %v2436_v17, %v6077_v8  ;;  %v2923_v26 = vand.u32 (!%p234_p2), %v2870_v19, %v6077_v8  ;;  %v3304_v45 = vcombine.high (!%p234_p2), %v6170_v43, %v6170_v43  ;;  %v6226_v62 = vld.sshfl [vmem:[%s6880_s1 + $0xc] sm:$0x33 pattern:$0x76325410] (!%p234_p2) }
   0xd   : > { %s261_s11 = scalar_select %p260_p3, %s6061_s25, 7  ;;  %818 = vmatprep.subr.bf16.mxu1 %v816_v16  ;;  %v1187_v27 = vand.u32 %v1134_v21, %v6077_v8  ;;  %v2920_v46 = vand.u32 %v6094_v15, %v6077_v8  ;;  %v1568_v63 = vcombine.high %v6226_v62, %v6226_v62  ;;  %v1184_v1 = vand.u32 %v6100_v18, %v6077_v8 }
   0xe   : > { %2491 = vmatprep.subr.bf16.mxu0 %v2489_v20  ;;  %v3357_v47 = vand.u32 %v3304_v45, %v6077_v8  ;;  %vm4500_vm6 = vcmask (!%p5207_p4), 261120  }
   0xf   : > { %s5766_s16 = smul.u32 432, %s261_s11  ;;  %v1621_v3 = vand.u32 %v1568_v63, %v6077_v8  ;;  %s4296_s11 = scalar_lea.vmem [#allocation2], %s4295_s10 }
  0x11   : > { %s6112_s19 = scalar_lea.vmem %s6879_s0, %s5766_s16 }
  0x12   : > { %v5802_v23 = vld [vmem:[%s6112_s19 + $0x90] sm:$0xff]   ;;  %v5803_v25 = vld [vmem:[%s6112_s19 + $0x98] sm:$0xff]   ;;  %v5805_v29 = vld [vmem:[%s6112_s19 + $0xa0] sm:$0xff]  }
  0x13   : > { %4758 = vmatmul.mubr.msk.bf16.vlgmr.msra.gmra.mrb[0].mxu1 %vm423_vm2, %v5802_v23  ;;  %4957 = vmatmul.mubr.msk.bf16.vlgmr.msra.gmra.mrb[0].mxu0 %vm423_vm2, %v5803_v25  ;;  %v5804_v28 = vld [vmem:[%s6112_s19 + $0x98] sm:$0xff]   ;;  %v5806_v30 = vld [vmem:[%s6112_s19 + $0xa0] sm:$0xff]   ;;  %v5807_v31 = vld [vmem:[%s6112_s19 + $0xa8] sm:$0xff]  }
  0x14   : > { %819 = vmatpush1.bf16.msra.mxu1 %v813_v22  ;;  %2492 = vmatpush1.bf16.msra.mxu0 %v2486_v24  ;;  %v5808_v32 = vld [vmem:[%s6112_s19 + $0xa8] sm:$0xff]   ;;  %v5809_v33 = vld [vmem:[%s6112_s19 + $0xb0] sm:$0xff]   ;;  %v5811_v35 = vld [vmem:[%s6112_s19 + $0xb8] sm:$0xff]  }
  0x15   : > { %524 = vmatprep.mubr.bf16.mxu1 %v6011_v6  ;;  %2099 = vmatprep.mubr.bf16.mxu0 %v6011_v6  ;;  %v5810_v34 = vld [vmem:[%s6112_s19 + $0xb0] sm:$0xff]   ;;  %v5812_v36 = vld [vmem:[%s6112_s19 + $0xb8] sm:$0xff]   ;;  %v5813_v37 = vld [vmem:[%s6112_s19 + $0xc0] sm:$0xff]  }
  0x16   : > { %2925 = vmatprep.subr.bf16.mxu0 %v2923_v26  ;;  %1189 = vmatprep.subr.bf16.mxu1 %v1187_v27  ;;  %v5814_v38 = vld [vmem:[%s6112_s19 + $0xc0] sm:$0xff]   ;;  %v5815_v39 = vld [vmem:[%s6112_s19 + $0xc8] sm:$0xff]   ;;  %v5817_v41 = vld [vmem:[%s6112_s19 + $0xd0] sm:$0xff]   ;;  %v3354_v26 = vand.u32 %v6170_v43, %v6077_v8  ;;  %v1618_v43 = vand.u32 %v6226_v62, %v6077_v8 }
  0x17   : > { %v5816_v40 = vld [vmem:[%s6112_s19 + $0xc8] sm:$0xff]   ;;  %v5818_v42 = vld [vmem:[%s6112_s19 + $0xd0] sm:$0xff]   ;;  %v5820_v48 = vld [vmem:[%s6112_s19 + $0xd8] sm:$0xff]  }
  0x18   : > { %v5819_v44 = vld [vmem:[%s6112_s19 + $0x128] sm:$0xff]   ;;  %v5821_v49 = vld [vmem:[%s6112_s19 + $0x130] sm:$0xff]   ;;  %v5822_v50 = vld [vmem:[%s6112_s19 + $0xe0] sm:$0xff]  }
  0x19   : > { %v5823_v51 = vld [vmem:[%s6112_s19 + $0x138] sm:$0xff]   ;;  %v5824_v52 = vld [vmem:[%s6112_s19 + $0xe8] sm:$0xff]   ;;  %v5825_v53 = vld [vmem:[%s6112_s19 + $0x140] sm:$0xff]  }
  0x1a   : > { %v5826_v54 = vld [vmem:[%s6112_s19 + $0xf0] sm:$0xff]   ;;  %v5827_v55 = vld [vmem:[%s6112_s19 + $0x148] sm:$0xff]   ;;  %v5828_v56 = vld [vmem:[%s6112_s19 + $0xf8] sm:$0xff]  }
  0x1b   : > { %4759 = vmatmul.mubr.msk.bf16.gmra.mrb[4].mxu1 %vm423_vm2, %v5804_v28  ;;  %4958 = vmatmul.mubr.msk.bf16.gmra.mrb[4].mxu0 %vm423_vm2, %v5805_v29  ;;  %v5829_v57 = vld [vmem:[%s6112_s19 + $0x150] sm:$0xff]   ;;  %v5830_v58 = vld [vmem:[%s6112_s19 + $0x100] sm:$0xff]   ;;  %v5831_v59 = vld [vmem:[%s6112_s19 + $0x158] sm:$0xff]  }
  0x1c   : > { %534 = vmatprep.mubr.bf16.mxu1 %v6011_v6  ;;  %2109 = vmatprep.mubr.bf16.mxu0 %v6011_v6  ;;  %v5832_v60 = vld [vmem:[%s6112_s19 + $0x108] sm:$0xff]   ;;  %v5833_v61 = vld [vmem:[%s6112_s19 + $0x160] sm:$0xff]   ;;  %v5837_v5 = vld [vmem:[%s6112_s19 + $0x170] sm:$0xff]  }
  0x1d   : > { %v5834_v0 = vld [vmem:[%s6112_s19] sm:$0xff]   ;;  %v5835_v2 = vld [vmem:[%s6112_s19 + $0x168] sm:$0xff]   ;;  %v5838_v7 = vld [vmem:[%s6112_s19 + $0x10] sm:$0xff]  }
  0x1e   : > { %v5836_v4 = vld [vmem:[%s6112_s19 + $0x8] sm:$0xff]   ;;  %v5839_v9 = vld [vmem:[%s6112_s19 + $0x178] sm:$0xff]   ;;  %v5841_v11 = vld [vmem:[%s6112_s19 + $0x180] sm:$0xff]  }
  0x1f   : > { %v5840_v10 = vld [vmem:[%s6112_s19 + $0x18] sm:$0xff]   ;;  %v5842_v13 = vld [vmem:[%s6112_s19 + $0x20] sm:$0xff]   ;;  %v5843_v15 = vld [vmem:[%s6112_s19 + $0x188] sm:$0xff]  }
  0x20   : > { %v5844_v16 = vld [vmem:[%s6112_s19 + $0x28] sm:$0xff]   ;;  %v5845_v17 = vld [vmem:[%s6112_s19 + $0x190] sm:$0xff]   ;;  %v5847_v19 = vld [vmem:[%s6112_s19 + $0x198] sm:$0xff]  }
  0x21   : > { %v5846_v18 = vld [vmem:[%s6112_s19 + $0x30] sm:$0xff]   ;;  %v5848_v20 = vld [vmem:[%s6112_s19 + $0x38] sm:$0xff]   ;;  %v5849_v21 = vld [vmem:[%s6112_s19 + $0x1a0] sm:$0xff]  }
  0x22   : > { %v6285_v22 = vld.sshfl [vmem:[%s6880_s1 + $0x20] sm:$0x33 pattern:$0x76325410]  ;;  %v5851_v25 = vld [vmem:[%s6112_s19 + $0x10] sm:$0xff]   ;;  %v5852_v28 = vld [vmem:[%s6112_s19 + $0x48] sm:$0xff]  }
  0x23   : > { %4760 = vmatmul.mubr.msk.bf16.gmra.mrb[8].mxu1 %vm423_vm2, %v5806_v30  ;;  %4959 = vmatmul.mubr.msk.bf16.gmra.mrb[8].mxu0 %vm423_vm2, %v5807_v31  ;;  %v3738_v23 = vcombine.high %v6285_v22, %v6285_v22  ;;  %v5850_v24 = vld [vmem:[%s6112_s19 + $0x40] sm:$0xff]   ;;  %v5853_v29 = vld [vmem:[%s6112_s19 + $0x18] sm:$0xff]   ;;  %v5854_v30 = vld [vmem:[%s6112_s19 + $0x50] sm:$0xff]  }
  0x24   : > { %544 = vmatprep.mubr.bf16.mxu1 %v6011_v6  ;;  %2119 = vmatprep.mubr.bf16.mxu0 %v6011_v6  ;;  %v5855_v31 = vld [vmem:[%s6112_s19 + $0x20] sm:$0xff]   ;;  %v5868_v45 = vld [vmem:[%s6112_s19 + $0x128] sm:$0xff]   ;;  %v5887_v63 = vld [vmem:[%s6112_s19 + $0xb0] sm:$0xff]  }
  0x25   : > { %v3791_v27 = vand.u32 %v3738_v23, %v6077_v8  ;;  %v5885_v62 = vld [vmem:[%s6112_s19 + $0xa8] sm:$0xff]   ;;  %v5908_v23 = vld [vmem:[%s6112_s19 + $0x30] sm:$0xff]  }
  0x2b   : > { %4761 = vmatmul.mubr.msk.bf16.gmra.mrb[12].mxu1 %vm423_vm2, %v5808_v32  ;;  %4960 = vmatmul.mubr.msk.bf16.gmra.mrb[12].mxu0 %vm423_vm2, %v5809_v33  ;;  %v5856_v32 = vld [vmem:[%s6112_s19 + $0x58] sm:$0xff]   ;;  %v5857_v33 = vld [vmem:[%s6112_s19 + $0x28] sm:$0xff]  }
  0x2c   : > { %554 = vmatprep.mubr.bf16.mxu1 %v6011_v6  ;;  %2129 = vmatprep.mubr.bf16.mxu0 %v6011_v6 }
  0x33   : > { %4762 = vmatmul.mubr.msk.bf16.gmra.mrb[16].mxu1 %vm423_vm2, %v5810_v34  ;;  %4961 = vmatmul.mubr.msk.bf16.gmra.mrb[16].mxu0 %vm423_vm2, %v5811_v35  ;;  %v5858_v34 = vld [vmem:[%s6112_s19 + $0x60] sm:$0xff]   ;;  %v5859_v35 = vld [vmem:[%s6112_s19 + $0x30] sm:$0xff]  }
  0x34   : > { %564 = vmatprep.mubr.bf16.mxu1 %v6011_v6  ;;  %2139 = vmatprep.mubr.bf16.mxu0 %v6011_v6 }
  0x3b   : > { %4763 = vmatmul.mubr.msk.bf16.gmra.mrb[20].mxu1 %vm423_vm2, %v5812_v36  ;;  %4962 = vmatmul.mubr.msk.bf16.gmra.mrb[20].mxu0 %vm423_vm2, %v5813_v37  ;;  %v5860_v36 = vld [vmem:[%s6112_s19 + $0x68] sm:$0xff]   ;;  %v5861_v37 = vld [vmem:[%s6112_s19 + $0x38] sm:$0xff]  }
  0x3c   : > { %574 = vmatprep.mubr.bf16.mxu1 %v6011_v6  ;;  %2149 = vmatprep.mubr.bf16.mxu0 %v6011_v6 }
  0x43   : > { %4764 = vmatmul.mubr.msk.bf16.gmra.mrb[24].mxu1 %vm423_vm2, %v5814_v38  ;;  %4963 = vmatmul.mubr.msk.bf16.gmra.mrb[24].mxu0 %vm423_vm2, %v5815_v39  ;;  %v5862_v38 = vld [vmem:[%s6112_s19 + $0x70] sm:$0xff]   ;;  %v5863_v39 = vld [vmem:[%s6112_s19 + $0x40] sm:$0xff]  }
  0x44   : > { %584 = vmatprep.mubr.bf16.mxu1 %v6011_v6  ;;  %2159 = vmatprep.mubr.bf16.mxu0 %v6011_v6 }
  0x4b   : > { %4765 = vmatmul.mubr.msk.bf16.gmra.mrb[28].mxu1 %vm423_vm2, %v5816_v40  ;;  %4964 = vmatmul.mubr.msk.bf16.gmra.mrb[28].mxu0 %vm423_vm2, %v5817_v41  ;;  %v5864_v40 = vld [vmem:[%s6112_s19 + $0x78] sm:$0xff]   ;;  %v5865_v41 = vld [vmem:[%s6112_s19 + $0x48] sm:$0xff]  }
  0x4c   : > { %594 = vmatprep.mubr.bf16.mxu1 %v6011_v6  ;;  %2523 = vmatprep.mubr.bf16.mxu0 %v6011_v6 }
  0x53   : > { %4766 = vmatmul.mubr.msk.bf16.gmra.mrb[32].mxu1 %vm423_vm2, %v5818_v42  ;;  %5023 = vmatmul.mubr.msk.bf16.vlgmr.msra.gmra.mrb[0].mxu0 %vm423_vm2, %v5819_v44  ;;  %v5866_v42 = vld [vmem:[%s6112_s19 + $0x120] sm:$0xff]   ;;  %v5867_v44 = vld [vmem:[%s6112_s19 + $0x50] sm:$0xff]  }
  0x54   : > { %604 = vmatprep.mubr.bf16.mxu1 %v6011_v6  ;;  %2926 = vmatpush1.bf16.msra.mxu0 %v2920_v46  ;;  %v5869_v46 = vld [vmem:[%s6112_s19 + $0x58] sm:$0xff]  }
  0x55   : > { %2533 = vmatprep.mubr.bf16.mxu0 %v6011_v6  ;;  %3359 = vmatprep.subr.bf16.mxu0 %v3357_v47  ;;  %v5870_v47 = vld [vmem:[%s6112_s19 + $0x130] sm:$0xff]  }
  0x5b   : > { %4767 = vmatmul.mubr.msk.bf16.gmra.mrb[36].mxu1 %vm423_vm2, %v5820_v48  ;;  %5024 = vmatmul.mubr.msk.bf16.gmra.mrb[4].mxu0 %vm423_vm2, %v5821_v49  ;;  %v5871_v48 = vld [vmem:[%s6112_s19 + $0x60] sm:$0xff]   ;;  %v5873_v49 = vld [vmem:[%s6112_s19 + $0x68] sm:$0xff]  }
  0x5c   : > { %614 = vmatprep.mubr.bf16.mxu1 %v6011_v6  ;;  %2543 = vmatprep.mubr.bf16.mxu0 %v6011_v6 }
  0x63   : > { %4768 = vmatmul.mubr.msk.bf16.gmra.mrb[40].mxu1 %vm423_vm2, %v5822_v50  ;;  %5025 = vmatmul.mubr.msk.bf16.gmra.mrb[8].mxu0 %vm423_vm2, %v5823_v51  ;;  %v5874_v50 = vld [vmem:[%s6112_s19 + $0x140] sm:$0xff]   ;;  %v5875_v51 = vld [vmem:[%s6112_s19 + $0x70] sm:$0xff]  }
  0x64   : > { %624 = vmatprep.mubr.bf16.mxu1 %v6011_v6  ;;  %2553 = vmatprep.mubr.bf16.mxu0 %v6011_v6 }
  0x6b   : > { %4769 = vmatmul.mubr.msk.bf16.gmra.mrb[44].mxu1 %vm423_vm2, %v5824_v52  ;;  %5026 = vmatmul.mubr.msk.bf16.gmra.mrb[12].mxu0 %vm423_vm2, %v5825_v53  ;;  %v5876_v52 = vld [vmem:[%s6112_s19 + $0x148] sm:$0xff]   ;;  %v5877_v53 = vld [vmem:[%s6112_s19 + $0x78] sm:$0xff]  }
  0x6c   : > { %634 = vmatprep.mubr.bf16.mxu1 %v6011_v6  ;;  %2563 = vmatprep.mubr.bf16.mxu0 %v6011_v6 }
  0x73   : > { %4770 = vmatmul.mubr.msk.bf16.gmra.mrb[48].mxu1 %vm423_vm2, %v5826_v54  ;;  %5027 = vmatmul.mubr.msk.bf16.gmra.mrb[16].mxu0 %vm423_vm2, %v5827_v55  ;;  %v5878_v54 = vld [vmem:[%s6112_s19 + $0x150] sm:$0xff]   ;;  %v5879_v55 = vld [vmem:[%s6112_s19 + $0x80] sm:$0xff]  }
  0x74   : > { %644 = vmatprep.mubr.bf16.mxu1 %v6011_v6  ;;  %2573 = vmatprep.mubr.bf16.mxu0 %v6011_v6 }
  0x7b   : > { %4771 = vmatmul.mubr.msk.bf16.gmra.mrb[52].mxu1 %vm423_vm2, %v5828_v56  ;;  %5028 = vmatmul.mubr.msk.bf16.gmra.mrb[20].mxu0 %vm423_vm2, %v5829_v57  ;;  %v5880_v56 = vld [vmem:[%s6112_s19 + $0x158] sm:$0xff]   ;;  %v5881_v57 = vld [vmem:[%s6112_s19 + $0x88] sm:$0xff]  }
  0x7c   : > { %654 = vmatprep.mubr.bf16.mxu1 %v6011_v6  ;;  %2583 = vmatprep.mubr.bf16.mxu0 %v6011_v6 }
  0x83   : > { %4772 = vmatmul.mubr.msk.bf16.gmra.mrb[56].mxu1 %vm423_vm2, %v5830_v58  ;;  %5029 = vmatmul.mubr.msk.bf16.gmra.mrb[24].mxu0 %vm423_vm2, %v5831_v59  ;;  %v5882_v58 = vld [vmem:[%s6112_s19 + $0x160] sm:$0xff]  }
  0x84   : > { %664 = vmatprep.mubr.bf16.mxu1 %v6011_v6  ;;  %2593 = vmatprep.mubr.bf16.mxu0 %v6011_v6  ;;  %v5883_v59 = vld [vmem:[%s6112_s19 + $0xa0] sm:$0xff]  }
  0x8b   : > { %4773 = vmatmul.mubr.msk.bf16.gmra.mrb[60].mxu1 %vm423_vm2, %v5832_v60  ;;  %5030 = vmatmul.mubr.msk.bf16.gmra.mrb[28].mxu0 %vm423_vm2, %v5833_v61  ;;  %v3788_v60 = vand.u32 %v6285_v22, %v6077_v8  ;;  %v5884_v61 = vld [vmem:[%s6112_s19 + $0x168] sm:$0xff]   ;;  %v5886_v8 = vld [vmem:[%s6112_s19 + $0x170] sm:$0xff]   ;;  %v5907_v22 = vld [vmem:[%s6112_s19 + $0x100] sm:$0xff]  }
  0x8c   : > { %850 = vmatprep.mubr.bf16.mxu1 %v6011_v6  ;;  %2603 = vmatprep.mubr.bf16.mxu0 %v6011_v6 }
  0x93   : > { %4791 = vmatmul.mubr.msk.bf16.vlgmr.msra.gmra.mrb[0].mxu1 %vm423_vm2, %v5834_v0  ;;  %5031 = vmatmul.mubr.msk.bf16.gmra.mrb[32].mxu0 %vm423_vm2, %v5835_v2  ;;  %v5888_v0 = vld [vmem:[%s6112_s19 + $0x178] sm:$0xff]   ;;  %v5890_v2 = vld [vmem:[%s6112_s19 + $0x180] sm:$0xff]  }
  0x94   : > { %1190 = vmatpush1.bf16.msra.mxu1 %v1184_v1  ;;  %860 = vmatprep.mubr.bf16.mxu1 %v6011_v6  ;;  %v5889_v1 = vld [vmem:[%s6112_s19 + $0xb8] sm:$0xff]  }
  0x95   : > { %2613 = vmatprep.mubr.bf16.mxu0 %v6011_v6  ;;  %1623 = vmatprep.subr.bf16.mxu1 %v1621_v3  ;;  %v5891_v3 = vld [vmem:[%s6112_s19 + $0xc0] sm:$0xff]  }
  0x9b   : > { %4792 = vmatmul.mubr.msk.bf16.gmra.mrb[4].mxu1 %vm423_vm2, %v5836_v4  ;;  %5032 = vmatmul.mubr.msk.bf16.gmra.mrb[36].mxu0 %vm423_vm2, %v5837_v5  ;;  %v5892_v4 = vld [vmem:[%s6112_s19 + $0x188] sm:$0xff]  }
  0x9c   : > { %870 = vmatprep.mubr.bf16.mxu1 %v6011_v6  ;;  %2623 = vmatprep.mubr.bf16.mxu0 %v6011_v6  ;;  %v5893_v5 = vld [vmem:[%s6112_s19 + $0xc8] sm:$0xff]  }
  0xa3   : > { %4793 = vmatmul.mubr.msk.bf16.gmra.mrb[8].mxu1 %vm423_vm2, %v5838_v7  ;;  %5033 = vmatmul.mubr.msk.bf16.gmra.mrb[40].mxu0 %vm423_vm2, %v5839_v9  ;;  %v5894_v7 = vld [vmem:[%s6112_s19 + $0x190] sm:$0xff]  }
  0xa4   : > { %880 = vmatprep.mubr.bf16.mxu1 %v6011_v6  ;;  %2633 = vmatprep.mubr.bf16.mxu0 %v6011_v6  ;;  %v5895_v9 = vld [vmem:[%s6112_s19 + $0xd0] sm:$0xff]  }
  0xab   : > { %4794 = vmatmul.mubr.msk.bf16.gmra.mrb[12].mxu1 %vm423_vm2, %v5840_v10  ;;  %5034 = vmatmul.mubr.msk.bf16.gmra.mrb[44].mxu0 %vm423_vm2, %v5841_v11  ;;  %v5896_v10 = vld [vmem:[%s6112_s19 + $0x198] sm:$0xff]  }
  0xac   : > { %890 = vmatprep.mubr.bf16.mxu1 %v6011_v6  ;;  %2643 = vmatprep.mubr.bf16.mxu0 %v6011_v6  ;;  %v5897_v11 = vld [vmem:[%s6112_s19 + $0xd8] sm:$0xff]  }
  0xb3   : > { %4795 = vmatmul.mubr.msk.bf16.gmra.mrb[16].mxu1 %vm423_vm2, %v5842_v13  ;;  %5035 = vmatmul.mubr.msk.bf16.gmra.mrb[48].mxu0 %vm423_vm2, %v5843_v15  ;;  %v5898_v13 = vld [vmem:[%s6112_s19 + $0x8] sm:$0xff]   ;;  %v5899_v15 = vld [vmem:[%s6112_s19 + $0xe0] sm:$0xff]  }
  0xb4   : > { %900 = vmatprep.mubr.bf16.mxu1 %v6011_v6  ;;  %2653 = vmatprep.mubr.bf16.mxu0 %v6011_v6 }
  0xbb   : > { %4796 = vmatmul.mubr.msk.bf16.gmra.mrb[20].mxu1 %vm423_vm2, %v5844_v16  ;;  %5036 = vmatmul.mubr.msk.bf16.gmra.mrb[52].mxu0 %vm423_vm2, %v5845_v17  ;;  %v5900_v16 = vld [vmem:[%s6112_s19 + $0x10] sm:$0xff]   ;;  %v5901_v17 = vld [vmem:[%s6112_s19 + $0xe8] sm:$0xff]  }
  0xbc   : > { %910 = vmatprep.mubr.bf16.mxu1 %v6011_v6  ;;  %2663 = vmatprep.mubr.bf16.mxu0 %v6011_v6 }
  0xc3   : > { %4797 = vmatmul.mubr.msk.bf16.gmra.mrb[24].mxu1 %vm423_vm2, %v5846_v18  ;;  %5037 = vmatmul.mubr.msk.bf16.gmra.mrb[56].mxu0 %vm423_vm2, %v5847_v19  ;;  %v5903_v18 = vld [vmem:[%s6112_s19 + $0xf0] sm:$0xff]   ;;  %v5904_v19 = vld [vmem:[%s6112_s19 + $0x20] sm:$0xff]  }
  0xc4   : > { %920 = vmatprep.mubr.bf16.mxu1 %v6011_v6  ;;  %2673 = vmatprep.mubr.bf16.mxu0 %v6011_v6 }
  0xcb   : > { %4798 = vmatmul.mubr.msk.bf16.gmra.mrb[28].mxu1 %vm423_vm2, %v5848_v20  ;;  %5038 = vmatmul.mubr.msk.bf16.gmra.mrb[60].mxu0 %vm423_vm2, %v5849_v21  ;;  %v5905_v20 = vld [vmem:[%s6112_s19 + $0xf8] sm:$0xff]   ;;  %v5906_v21 = vld [vmem:[%s6112_s19 + $0x28] sm:$0xff]  }
  0xcc   : > { %930 = vmatprep.mubr.bf16.mxu1 %v6011_v6  ;;  %2957 = vmatprep.mubr.bf16.mxu0 %v6011_v6 }
  0xd3   : > { %4799 = vmatmul.mubr.msk.bf16.gmra.mrb[32].mxu1 %vm423_vm2, %v5850_v24  ;;  %5057 = vmatmul.mubr.msk.bf16.vlgmr.msra.gmra.mrb[0].mxu0 %vm423_vm2, %v5851_v25  ;;  %v5909_v24 = vld [vmem:[%s6112_s19 + $0x108] sm:$0xff]   ;;  %v5910_v25 = vld [vmem:[%s6112_s19 + $0x38] sm:$0xff]  }
  0xd4   : > { %940 = vmatprep.mubr.bf16.mxu1 %v6011_v6  ;;  %3360 = vmatpush1.bf16.msra.mxu0 %v3354_v26  ;;  %v5911_v26 = vld [vmem:[%s6112_s19 + $0x110] sm:$0xff]  }
  0xd5   : > { %2967 = vmatprep.mubr.bf16.mxu0 %v6011_v6  ;;  %3793 = vmatprep.subr.bf16.mxu0 %v3791_v27  ;;  %v5912_v27 = vld [vmem:[%s6112_s19 + $0x40] sm:$0xff]  }
  0xdb   : > { %4800 = vmatmul.mubr.msk.bf16.gmra.mrb[36].mxu1 %vm423_vm2, %v5852_v28  ;;  %5058 = vmatmul.mubr.msk.bf16.gmra.mrb[4].mxu0 %vm423_vm2, %v5853_v29  ;;  %v5913_v28 = vld [vmem:[%s6112_s19 + $0x118] sm:$0xff]   ;;  %v5914_v29 = vld [vmem:[%s6112_s19 + $0x48] sm:$0xff]  }
  0xdc   : > { %950 = vmatprep.mubr.bf16.mxu1 %v6011_v6  ;;  %2977 = vmatprep.mubr.bf16.mxu0 %v6011_v6 }
  0xe3   : > { %4801 = vmatmul.mubr.msk.bf16.gmra.mrb[40].mxu1 %vm423_vm2, %v5854_v30  ;;  %5059 = vmatmul.mubr.msk.bf16.gmra.mrb[8].mxu0 %vm423_vm2, %v5855_v31  ;;  %v5915_v30 = vld [vmem:[%s6112_s19 + $0x130] sm:$0xff]  }
  0xe4   : > { %960 = vmatprep.mubr.bf16.mxu1 %v6011_v6  ;;  %2987 = vmatprep.mubr.bf16.mxu0 %v6011_v6  ;;  %v5916_v31 = vld [vmem:[%s6112_s19 + $0x50] sm:$0xff]  }
  0xeb   : > { %4802 = vmatmul.mubr.msk.bf16.gmra.mrb[44].mxu1 %vm423_vm2, %v5856_v32  ;;  %5060 = vmatmul.mubr.msk.bf16.gmra.mrb[12].mxu0 %vm423_vm2, %v5857_v33  ;;  %v5917_v32 = vld [vmem:[%s6112_s19 + $0x138] sm:$0xff]  }
  0xec   : > { %970 = vmatprep.mubr.bf16.mxu1 %v6011_v6  ;;  %2997 = vmatprep.mubr.bf16.mxu0 %v6011_v6  ;;  %v5918_v33 = vld [vmem:[%s6112_s19 + $0x58] sm:$0xff]  }
  0xf3   : > { %4803 = vmatmul.mubr.msk.bf16.gmra.mrb[48].mxu1 %vm423_vm2, %v5858_v34  ;;  %5061 = vmatmul.mubr.msk.bf16.gmra.mrb[16].mxu0 %vm423_vm2, %v5859_v35  ;;  %v5919_v34 = vld [vmem:[%s6112_s19 + $0x140] sm:$0xff]  }
  0xf4   : > { %980 = vmatprep.mubr.bf16.mxu1 %v6011_v6  ;;  %3007 = vmatprep.mubr.bf16.mxu0 %v6011_v6  ;;  %v5920_v35 = vld [vmem:[%s6112_s19 + $0x60] sm:$0xff]  }
  0xfb   : > { %4804 = vmatmul.mubr.msk.bf16.gmra.mrb[52].mxu1 %vm423_vm2, %v5860_v36  ;;  %5062 = vmatmul.mubr.msk.bf16.gmra.mrb[20].mxu0 %vm423_vm2, %v5861_v37  ;;  %v5921_v36 = vld [vmem:[%s6112_s19 + $0x148] sm:$0xff]  }
  0xfc   : > { %990 = vmatprep.mubr.bf16.mxu1 %v6011_v6  ;;  %3017 = vmatprep.mubr.bf16.mxu0 %v6011_v6  ;;  %v5922_v37 = vld [vmem:[%s6112_s19 + $0x68] sm:$0xff]  }
 0x103   : > { %4805 = vmatmul.mubr.msk.bf16.gmra.mrb[56].mxu1 %vm423_vm2, %v5862_v38  ;;  %5063 = vmatmul.mubr.msk.bf16.gmra.mrb[24].mxu0 %vm423_vm2, %v5863_v39  ;;  %v5923_v38 = vld [vmem:[%s6112_s19 + $0x150] sm:$0xff]  }
 0x104   : > { %1000 = vmatprep.mubr.bf16.mxu1 %v6011_v6  ;;  %3027 = vmatprep.mubr.bf16.mxu0 %v6011_v6  ;;  %v5924_v39 = vld [vmem:[%s6112_s19 + $0x70] sm:$0xff]  }
 0x10b   : > { %4806 = vmatmul.mubr.msk.bf16.gmra.mrb[60].mxu1 %vm423_vm2, %v5864_v40  ;;  %5064 = vmatmul.mubr.msk.bf16.gmra.mrb[28].mxu0 %vm423_vm2, %v5865_v41  ;;  %v5925_v40 = vld [vmem:[%s6112_s19 + $0x158] sm:$0xff]  }
 0x10c   : > { %1221 = vmatprep.mubr.bf16.mxu1 %v6011_v6  ;;  %3037 = vmatprep.mubr.bf16.mxu0 %v6011_v6  ;;  %v5926_v41 = vld [vmem:[%s6112_s19 + $0x78] sm:$0xff]  }
 0x113   : > { %4857 = vmatmul.mubr.msk.bf16.vlgmr.msra.gmra.mrb[0].mxu1 %vm423_vm2, %v5866_v42  ;;  %5065 = vmatmul.mubr.msk.bf16.gmra.mrb[32].mxu0 %vm423_vm2, %v5867_v44  ;;  %v5927_v42 = vld [vmem:[%s6112_s19 + $0x160] sm:$0xff]   ;;  %v5929_v44 = vld [vmem:[%s6112_s19 + $0x168] sm:$0xff]  }
 0x114   : > { %1624 = vmatpush1.bf16.msra.mxu1 %v1618_v43  ;;  %1231 = vmatprep.mubr.bf16.mxu1 %v6011_v6  ;;  %v5928_v43 = vld [vmem:[%s6112_s19 + $0x80] sm:$0xff]  }
 0x115   : > { %3047 = vmatprep.mubr.bf16.mxu0 %v6011_v6  ;;  %5252 = vmatprep.subr.bf16.mxu1 %v6084_v12  ;;  %v5872_v12 = vld [vmem:[%s6112_s19 + $0x138] sm:$0xff]  }
 0x11b   : > { %4858 = vmatmul.mubr.msk.bf16.gmra.mrb[4].mxu1 %vm423_vm2, %v5868_v45  ;;  %5066 = vmatmul.mubr.msk.bf16.gmra.mrb[36].mxu0 %vm423_vm2, %v5869_v46  ;;  %v5930_v45 = vld [vmem:[%s6112_s19 + $0xd8] sm:$0xff]   ;;  %v5931_v46 = vld [vmem:[%s6112_s19 + $0x170] sm:$0xff]  }
 0x11c   : > { %1241 = vmatprep.mubr.bf16.mxu1 %v6011_v6  ;;  %3057 = vmatprep.mubr.bf16.mxu0 %v6011_v6 }
 0x123   : > { %4859 = vmatmul.mubr.msk.bf16.gmra.mrb[8].mxu1 %vm423_vm2, %v5870_v47  ;;  %5067 = vmatmul.mubr.msk.bf16.gmra.mrb[40].mxu0 %vm423_vm2, %v5871_v48  ;;  %v5932_v47 = vld [vmem:[%s6112_s19 + $0xe0] sm:$0xff]   ;;  %v5933_v48 = vld [vmem:[%s6112_s19 + $0x178] sm:$0xff]  }
 0x124   : > { %1251 = vmatprep.mubr.bf16.mxu1 %v6011_v6  ;;  %3067 = vmatprep.mubr.bf16.mxu0 %v6011_v6 }
 0x12b   : > { %4860 = vmatmul.mubr.msk.bf16.gmra.mrb[12].mxu1 %vm423_vm2, %v5872_v12  ;;  %5068 = vmatmul.mubr.msk.bf16.gmra.mrb[44].mxu0 %vm423_vm2, %v5873_v49  ;;  %v5934_v12 = vld [vmem:[%s6112_s19 + $0xe8] sm:$0xff]   ;;  %v5935_v49 = vld [vmem:[%s6112_s19 + $0x180] sm:$0xff]  }
 0x12c   : > { %1261 = vmatprep.mubr.bf16.mxu1 %v6011_v6  ;;  %3077 = vmatprep.mubr.bf16.mxu0 %v6011_v6 }
 0x133   : > { %4861 = vmatmul.mubr.msk.bf16.gmra.mrb[16].mxu1 %vm423_vm2, %v5874_v50  ;;  %5069 = vmatmul.mubr.msk.bf16.gmra.mrb[48].mxu0 %vm423_vm2, %v5875_v51  ;;  %v5936_v50 = vld [vmem:[%s6112_s19 + $0xf0] sm:$0xff]   ;;  %v5937_v51 = vld [vmem:[%s6112_s19 + $0x188] sm:$0xff]  }
 0x134   : > { %1271 = vmatprep.mubr.bf16.mxu1 %v6011_v6  ;;  %3087 = vmatprep.mubr.bf16.mxu0 %v6011_v6 }
 0x13b   : > { %4862 = vmatmul.mubr.msk.bf16.gmra.mrb[20].mxu1 %vm423_vm2, %v5876_v52  ;;  %5070 = vmatmul.mubr.msk.bf16.gmra.mrb[52].mxu0 %vm423_vm2, %v5877_v53  ;;  %v5938_v52 = vld [vmem:[%s6112_s19 + $0xf8] sm:$0xff]   ;;  %v5939_v53 = vld [vmem:[%s6112_s19 + $0x190] sm:$0xff]  }
 0x13c   : > { %1281 = vmatprep.mubr.bf16.mxu1 %v6011_v6  ;;  %3097 = vmatprep.mubr.bf16.mxu0 %v6011_v6 }
 0x143   : > { %4863 = vmatmul.mubr.msk.bf16.gmra.mrb[24].mxu1 %vm423_vm2, %v5878_v54  ;;  %5071 = vmatmul.mubr.msk.bf16.gmra.mrb[56].mxu0 %vm423_vm2, %v5879_v55  ;;  %v5940_v54 = vld [vmem:[%s6112_s19 + $0x100] sm:$0xff]   ;;  %v5941_v55 = vld [vmem:[%s6112_s19 + $0x198] sm:$0xff]  }
 0x144   : > { %1291 = vmatprep.mubr.bf16.mxu1 %v6011_v6  ;;  %3107 = vmatprep.mubr.bf16.mxu0 %v6011_v6 }
 0x14b   : > { %4864 = vmatmul.mubr.msk.bf16.gmra.mrb[28].mxu1 %vm423_vm2, %v5880_v56  ;;  %5072 = vmatmul.mubr.msk.bf16.gmra.mrb[60].mxu0 %vm423_vm2, %v5881_v57  ;;  %v5942_v56 = vld [vmem:[%s6112_s19 + $0x108] sm:$0xff]   ;;  %v5943_v57 = vld [vmem:[%s6112_s19 + $0x1a0] sm:$0xff]  }
 0x14c   : > { %1301 = vmatprep.mubr.bf16.mxu1 %v6011_v6  ;;  %3391 = vmatprep.mubr.bf16.mxu0 %v6011_v6 }
 0x153   : > { %4865 = vmatmul.mubr.msk.bf16.gmra.mrb[32].mxu1 %vm423_vm2, %v5882_v58  ;;  %5123 = vmatmul.mubr.msk.bf16.vlgmr.msra.gmra.mrb[0].mxu0 %vm423_vm2, %v5883_v59  ;;  %v5944_v58 = vld [vmem:[%s6112_s19 + $0x110] sm:$0xff]   ;;  %v5945_v59 = vld [vmem:[%s6112_s19 + $0x1a8] sm:$0xff]  }
 0x154   : > { %1311 = vmatprep.mubr.bf16.mxu1 %v6011_v6  ;;  %3794 = vmatpush1.bf16.msra.mxu0 %v3788_v60 }
 0x155   : > { %3401 = vmatprep.mubr.bf16.mxu0 %v6011_v6 }
 0x15b   : > { %4866 = vmatmul.mubr.msk.bf16.gmra.mrb[36].mxu1 %vm423_vm2, %v5884_v61  ;;  %5124 = vmatmul.mubr.msk.bf16.gmra.mrb[4].mxu0 %vm423_vm2, %v5885_v62 }
 0x15c   : > { %1321 = vmatprep.mubr.bf16.mxu1 %v6011_v6  ;;  %3411 = vmatprep.mubr.bf16.mxu0 %v6011_v6 }
 0x163   : > { %4867 = vmatmul.mubr.msk.bf16.gmra.mrb[40].mxu1 %vm423_vm2, %v5886_v8  ;;  %5125 = vmatmul.mubr.msk.bf16.gmra.mrb[8].mxu0 %vm423_vm2, %v5887_v63 }
 0x164   : > { %1331 = vmatprep.mubr.bf16.mxu1 %v6011_v6  ;;  %3421 = vmatprep.mubr.bf16.mxu0 %v6011_v6 }
 0x16b   : > { %4868 = vmatmul.mubr.msk.bf16.gmra.mrb[44].mxu1 %vm423_vm2, %v5888_v0  ;;  %5126 = vmatmul.mubr.msk.bf16.gmra.mrb[12].mxu0 %vm423_vm2, %v5889_v1 }
 0x16c   : > { %1341 = vmatprep.mubr.bf16.mxu1 %v6011_v6  ;;  %3431 = vmatprep.mubr.bf16.mxu0 %v6011_v6 }
 0x173   : > { %4869 = vmatmul.mubr.msk.bf16.gmra.mrb[48].mxu1 %vm423_vm2, %v5890_v2  ;;  %5127 = vmatmul.mubr.msk.bf16.gmra.mrb[16].mxu0 %vm423_vm2, %v5891_v3 }
 0x174   : > { %1351 = vmatprep.mubr.bf16.mxu1 %v6011_v6  ;;  %3441 = vmatprep.mubr.bf16.mxu0 %v6011_v6 }
 0x17b   : > { %4870 = vmatmul.mubr.msk.bf16.gmra.mrb[52].mxu1 %vm423_vm2, %v5892_v4  ;;  %5128 = vmatmul.mubr.msk.bf16.gmra.mrb[20].mxu0 %vm423_vm2, %v5893_v5 }
 0x17c   : > { %1361 = vmatprep.mubr.bf16.mxu1 %v6011_v6  ;;  %3451 = vmatprep.mubr.bf16.mxu0 %v6011_v6 }
 0x183   : > { %4871 = vmatmul.mubr.msk.bf16.gmra.mrb[56].mxu1 %vm423_vm2, %v5894_v7  ;;  %5129 = vmatmul.mubr.msk.bf16.gmra.mrb[24].mxu0 %vm423_vm2, %v5895_v9 }
 0x184   : > { %1371 = vmatprep.mubr.bf16.mxu1 %v6011_v6  ;;  %3461 = vmatprep.mubr.bf16.mxu0 %v6011_v6 }
 0x18b   : > { %4872 = vmatmul.mubr.msk.bf16.gmra.mrb[60].mxu1 %vm423_vm2, %v5896_v10  ;;  %5130 = vmatmul.mubr.msk.bf16.gmra.mrb[28].mxu0 %vm423_vm2, %v5897_v11 }
 0x18c   : > { %1655 = vmatprep.mubr.bf16.mxu1 %v6011_v6  ;;  %3471 = vmatprep.mubr.bf16.mxu0 %v6011_v6 }
 0x193   : > { %4891 = vmatmul.mubr.msk.bf16.vlgmr.msra.gmra.mrb[0].mxu1 %vm423_vm2, %v5898_v13  ;;  %5131 = vmatmul.mubr.msk.bf16.gmra.mrb[32].mxu0 %vm423_vm2, %v5899_v15 }
 0x194   : > { %5253 = vmatpush1.bf16.msra.mxu1 %v6088_v14  ;;  %1665 = vmatprep.mubr.bf16.mxu1 %v6011_v6  ;;  %v5902_v14 = vld [vmem:[%s6112_s19 + $0x18] sm:$0xff]  }
 0x195   : > { %3481 = vmatprep.mubr.bf16.mxu0 %v6011_v6 }
 0x19b   : > { %4892 = vmatmul.mubr.msk.bf16.gmra.mrb[4].mxu1 %vm423_vm2, %v5900_v16  ;;  %5132 = vmatmul.mubr.msk.bf16.gmra.mrb[36].mxu0 %vm423_vm2, %v5901_v17 }
 0x19c   : > { %1675 = vmatprep.mubr.bf16.mxu1 %v6011_v6  ;;  %3491 = vmatprep.mubr.bf16.mxu0 %v6011_v6 }
 0x1a3   : > { %4893 = vmatmul.mubr.msk.bf16.gmra.mrb[8].mxu1 %vm423_vm2, %v5902_v14  ;;  %5133 = vmatmul.mubr.msk.bf16.gmra.mrb[40].mxu0 %vm423_vm2, %v5903_v18 }
 0x1a4   : > { %1685 = vmatprep.mubr.bf16.mxu1 %v6011_v6  ;;  %3501 = vmatprep.mubr.bf16.mxu0 %v6011_v6 }
 0x1ab   : > { %4894 = vmatmul.mubr.msk.bf16.gmra.mrb[12].mxu1 %vm423_vm2, %v5904_v19  ;;  %5134 = vmatmul.mubr.msk.bf16.gmra.mrb[44].mxu0 %vm423_vm2, %v5905_v20 }
 0x1ac   : > { %1695 = vmatprep.mubr.bf16.mxu1 %v6011_v6  ;;  %3511 = vmatprep.mubr.bf16.mxu0 %v6011_v6 }
 0x1b3   : > { %4895 = vmatmul.mubr.msk.bf16.gmra.mrb[16].mxu1 %vm423_vm2, %v5906_v21  ;;  %5135 = vmatmul.mubr.msk.bf16.gmra.mrb[48].mxu0 %vm423_vm2, %v5907_v22 }
 0x1b4   : > { %1705 = vmatprep.mubr.bf16.mxu1 %v6011_v6  ;;  %3521 = vmatprep.mubr.bf16.mxu0 %v6011_v6 }
 0x1bb   : > { %4896 = vmatmul.mubr.msk.bf16.gmra.mrb[20].mxu1 %vm423_vm2, %v5908_v23  ;;  %5136 = vmatmul.mubr.msk.bf16.gmra.mrb[52].mxu0 %vm423_vm2, %v5909_v24 }
 0x1bc   : > { %1715 = vmatprep.mubr.bf16.mxu1 %v6011_v6  ;;  %3531 = vmatprep.mubr.bf16.mxu0 %v6011_v6 }
 0x1c3   : > { %4897 = vmatmul.mubr.msk.bf16.gmra.mrb[24].mxu1 %vm423_vm2, %v5910_v25  ;;  %5137 = vmatmul.mubr.msk.bf16.gmra.mrb[56].mxu0 %vm423_vm2, %v5911_v26  ;;  %v4052_v25 = vlaneseq }
 0x1c4   : > { %1725 = vmatprep.mubr.bf16.mxu1 %v6011_v6  ;;  %3541 = vmatprep.mubr.bf16.mxu0 %v6011_v6 }
 0x1c5   : > { %vm4287_vm3 = vcmp.lt.s32.totalorder %v4052_v25, 256 }
 0x1cb   : > { %4898 = vmatmul.mubr.msk.bf16.gmra.mrb[28].mxu1 %vm423_vm2, %v5912_v27  ;;  %5138 = vmatmul.mubr.msk.bf16.gmra.mrb[60].mxu0 %vm423_vm2, %v5913_v28  ;;  %v6627_v27 = vshrl.u32 %v4052_v25, 7  ;;  %v5951_v25 = vld [vmem:[%s6882_s3 + $0x8] sm:$0xff] (!%p5207_p4)  }
 0x1cc   : > { %1735 = vmatprep.mubr.bf16.mxu1 %v6011_v6  ;;  %3825 = vmatprep.mubr.bf16.mxu0 %v6011_v6 }
 0x1d3   : > { %4899 = vmatmul.mubr.msk.bf16.gmra.mrb[32].mxu1 %vm423_vm2, %v5914_v29  ;;  %5189 = vmatmul.mubr.msk.bf16.vlgmr.msra.gmra.mrb[0].mxu0 %vm423_vm2, %v5915_v30 }
 0x1d4   : > { %1745 = vmatprep.mubr.bf16.mxu1 %v6011_v6  ;;  %3835 = vmatprep.mubr.bf16.mxu0 %v6011_v6 }
 0x1db   : > { %4900 = vmatmul.mubr.msk.bf16.gmra.mrb[36].mxu1 %vm423_vm2, %v5916_v31  ;;  %5190 = vmatmul.mubr.msk.bf16.gmra.mrb[4].mxu0 %vm423_vm2, %v5917_v32  ;;  %v4054_v31 = vsub.s32 0, %v6627_v27  ;;  %v4050_v32 = vld [vmem:[%s6881_s2] sm:$0x3] }
 0x1dc   : > { %1755 = vmatprep.mubr.bf16.mxu1 %v6011_v6  ;;  %3845 = vmatprep.mubr.bf16.mxu0 %v6011_v6 }
 0x1e3   : > { %4901 = vmatmul.mubr.msk.bf16.gmra.mrb[40].mxu1 %vm423_vm2, %v5918_v33  ;;  %5191 = vmatmul.mubr.msk.bf16.gmra.mrb[8].mxu0 %vm423_vm2, %v5919_v34  ;;  %v4058_v33 = vsub.s32 1, %v6627_v27  ;;  %v6640_v34 = vrot.slane %v4050_v32, %v4054_v31 }
 0x1e4   : > { %1765 = vmatprep.mubr.bf16.mxu1 %v6011_v6  ;;  %3855 = vmatprep.mubr.bf16.mxu0 %v6011_v6 }
 0x1eb   : > { %4902 = vmatmul.mubr.msk.bf16.gmra.mrb[44].mxu1 %vm423_vm2, %v5920_v35  ;;  %5192 = vmatmul.mubr.msk.bf16.gmra.mrb[12].mxu0 %vm423_vm2, %v5921_v36  ;;  %v6642_v36 = vrot.slane %v4050_v32, %v4058_v33 }
 0x1ec   : > { %1775 = vmatprep.mubr.bf16.mxu1 %v6011_v6  ;;  %3865 = vmatprep.mubr.bf16.mxu0 %v6011_v6 }
 0x1f3   : > { %4903 = vmatmul.mubr.msk.bf16.gmra.mrb[48].mxu1 %vm423_vm2, %v5922_v37  ;;  %5193 = vmatmul.mubr.msk.bf16.gmra.mrb[16].mxu0 %vm423_vm2, %v5923_v38 }
 0x1f4   : > { %1785 = vmatprep.mubr.bf16.mxu1 %v6011_v6  ;;  %3875 = vmatprep.mubr.bf16.mxu0 %v6011_v6 }
 0x1fb   : > { %4904 = vmatmul.mubr.msk.bf16.gmra.mrb[52].mxu1 %vm423_vm2, %v5924_v39  ;;  %5194 = vmatmul.mubr.msk.bf16.gmra.mrb[20].mxu0 %vm423_vm2, %v5925_v40 }
 0x1fc   : > { %1795 = vmatprep.mubr.bf16.mxu1 %v6011_v6  ;;  %3885 = vmatprep.mubr.bf16.mxu0 %v6011_v6 }
 0x203   : > { %4905 = vmatmul.mubr.msk.bf16.gmra.mrb[56].mxu1 %vm423_vm2, %v5926_v41  ;;  %5195 = vmatmul.mubr.msk.bf16.gmra.mrb[24].mxu0 %vm423_vm2, %v5927_v42 }
 0x204   : > { %1805 = vmatprep.mubr.bf16.mxu1 %v6011_v6  ;;  %3895 = vmatprep.mubr.bf16.mxu0 %v6011_v6 }
 0x20b   : > { %4906 = vmatmul.mubr.msk.bf16.gmra.mrb[60].mxu1 %vm423_vm2, %v5928_v43  ;;  %5196 = vmatmul.mubr.msk.bf16.gmra.mrb[28].mxu0 %vm423_vm2, %v5929_v44 }
 0x20c   : > { %2169 = vmatprep.mubr.bf16.mxu1 %v6011_v6  ;;  %3905 = vmatprep.mubr.bf16.mxu0 %v6011_v6 }
 0x213   : > { %4965 = vmatmul.mubr.msk.bf16.vlgmr.msra.gmra.mrb[32].mxu1 %vm423_vm2, %v5930_v45  ;;  %5197 = vmatmul.mubr.msk.bf16.gmra.mrb[32].mxu0 %vm423_vm2, %v5931_v46 }
 0x214   : > { %2179 = vmatprep.mubr.bf16.mxu1 %v6011_v6  ;;  %3915 = vmatprep.mubr.bf16.mxu0 %v6011_v6 }
 0x21b   : > { %4966 = vmatmul.mubr.msk.bf16.gmra.mrb[36].mxu1 %vm423_vm2, %v5932_v47  ;;  %5198 = vmatmul.mubr.msk.bf16.gmra.mrb[36].mxu0 %vm423_vm2, %v5933_v48 }
 0x21c   : > { %2189 = vmatprep.mubr.bf16.mxu1 %v6011_v6  ;;  %3925 = vmatprep.mubr.bf16.mxu0 %v6011_v6 }
 0x223   : > { %4967 = vmatmul.mubr.msk.bf16.gmra.mrb[40].mxu1 %vm423_vm2, %v5934_v12  ;;  %5199 = vmatmul.mubr.msk.bf16.gmra.mrb[40].mxu0 %vm423_vm2, %v5935_v49 }
 0x224   : > { %2199 = vmatprep.mubr.bf16.mxu1 %v6011_v6  ;;  %3935 = vmatprep.mubr.bf16.mxu0 %v6011_v6 }
 0x22b   : > { %4968 = vmatmul.mubr.msk.bf16.gmra.mrb[44].mxu1 %vm423_vm2, %v5936_v50  ;;  %5200 = vmatmul.mubr.msk.bf16.gmra.mrb[44].mxu0 %vm423_vm2, %v5937_v51 }
 0x22c   : > { %2209 = vmatprep.mubr.bf16.mxu1 %v6011_v6  ;;  %3945 = vmatprep.mubr.bf16.mxu0 %v6011_v6 }
 0x233   : > { %4969 = vmatmul.mubr.msk.bf16.gmra.mrb[48].mxu1 %vm423_vm2, %v5938_v52  ;;  %5201 = vmatmul.mubr.msk.bf16.gmra.mrb[48].mxu0 %vm423_vm2, %v5939_v53 }
 0x234   : > { %2219 = vmatprep.mubr.bf16.mxu1 %v6011_v6  ;;  %3955 = vmatprep.mubr.bf16.mxu0 %v6011_v6 }
 0x23b   : > { %4970 = vmatmul.mubr.msk.bf16.gmra.mrb[52].mxu1 %vm423_vm2, %v5940_v54  ;;  %5202 = vmatmul.mubr.msk.bf16.gmra.mrb[52].mxu0 %vm423_vm2, %v5941_v55 }
 0x23c   : > { %2229 = vmatprep.mubr.bf16.mxu1 %v6011_v6  ;;  %3965 = vmatprep.mubr.bf16.mxu0 %v6011_v6 }
 0x243   : > { %4971 = vmatmul.mubr.msk.bf16.gmra.mrb[56].mxu1 %vm423_vm2, %v5942_v56  ;;  %5203 = vmatmul.mubr.msk.bf16.gmra.mrb[56].mxu0 %vm423_vm2, %v5943_v57 }
 0x244   : > { %2239 = vmatprep.mubr.bf16.mxu1 %v6011_v6  ;;  %3975 = vmatprep.mubr.bf16.mxu0 %v6011_v6 }
 0x24b   : > { %4972 = vmatmul.mubr.msk.bf16.gmra.mrb[60].mxu1 %vm423_vm2, %v5944_v58  ;;  %5204 = vmatmul.mubr.msk.bf16.gmra.mrb[60].mxu0 %vm423_vm2, %v5945_v59 }
 0x266   : > { %v1657_v60 = vpop.f32.mrb[0].mxu1 }
 0x267   : > { %v1659_v61 = vpop.f32.mrb[1].mxu1 }
 0x268   : > { %v1661_v62 = vpop.f32.mrb[2].mxu1 }
 0x269   : > { %v1663_v8 = vpop.f32.mrb[3].mxu1 }
 0x26e   : > { %v1667_v63 = vpop.f32.mrb[4].mxu1 }
 0x26f   : > { %v1669_v0 = vpop.f32.mrb[5].mxu1 }
 0x270   : > { %v1671_v1 = vpop.f32.mrb[6].mxu1 }
 0x271   : > { %v1673_v2 = vpop.f32.mrb[7].mxu1 }
 0x276   : > { %v6584_v3 = vpop.f32.mrb[8].mxu1 }
 0x277   : > { %v6586_v4 = vpop.f32.mrb[9].mxu1 }
 0x278   : > { %v6588_v5 = vpop.f32.mrb[10].mxu1 }
 0x279   : > { %v6590_v6 = vpop.f32.mrb[11].mxu1 }
 0x27e   : > { %v6592_v7 = vpop.f32.mrb[12].mxu1 }
 0x27f   : > { %v6594_v9 = vpop.f32.mrb[13].mxu1 }
 0x280   : > { %v6596_v10 = vpop.f32.mrb[14].mxu1 }
 0x281   : > { %v6598_v11 = vpop.f32.mrb[15].mxu1 }
 0x286   : > { %v6600_v13 = vpop.f32.mrb[16].mxu1 }
 0x287   : > { %v6602_v15 = vpop.f32.mrb[17].mxu1 }
 0x288   : > { %v6604_v16 = vpop.f32.mrb[18].mxu1 }
 0x289   : > { %v6606_v17 = vpop.f32.mrb[19].mxu1 }
 0x28e   : > { %v6608_v14 = vpop.f32.mrb[20].mxu1 }
 0x28f   : > { %v6610_v18 = vpop.f32.mrb[21].mxu1 }
 0x290   : > { %v6612_v19 = vpop.f32.mrb[22].mxu1 }
 0x291   : > { %v6614_v20 = vpop.f32.mrb[23].mxu1 }
 0x296   : > { %v6616_v21 = vpop.f32.mrb[24].mxu1 }
 0x297   : > { %v6618_v22 = vpop.f32.mrb[25].mxu1 }
 0x298   : > { %v6620_v23 = vpop.f32.mrb[26].mxu1 }
 0x299   : > { %v6622_v24 = vpop.f32.mrb[27].mxu1 }
 0x29e   : > { %v6624_v26 = vpop.f32.mrb[28].mxu1 }
 0x29f   : > { %v6629_v28 = vpop.f32.mrb[29].mxu1 }
 0x2a0   : > { %v6631_v29 = vpop.f32.mrb[30].mxu1 }
 0x2a1   : > { %v6633_v30 = vpop.f32.mrb[31].mxu1 }
 0x2a6   : > { %v3827_v35 = vpop.f32.mrb[0].mxu0 }
 0x2a7   : > { %v5254_v37 = vadd.f32 %v3827_v35, %v1657_v60  ;;  %v3829_v38 = vpop.f32.mrb[1].mxu0 }
 0x2a8   : > { %v5255_v39 = vadd.f32 %v3829_v38, %v1659_v61  ;;  %v3831_v40 = vpop.f32.mrb[2].mxu0 }
 0x2a9   : > { %v4062_v41 = vadd.f32 %v5254_v37, %v6640_v34  ;;  %v5256_v42 = vadd.f32 %v3831_v40, %v1661_v62  ;;  %v3833_v43 = vpop.f32.mrb[3].mxu0 }
 0x2aa   : > { %v4063_v44 = vadd.f32 %v5255_v39, %v6642_v36  ;;  %v5257_v45 = vadd.f32 %v3833_v43, %v1663_v8 }
 0x2ab   : > { %v4064_v46 = vadd.f32 %v5256_v42, %v6640_v34  ;;  %v4126_v48 = vmax.f32 %v4062_v41, 0.0 }
 0x2ac   : > { %v4065_v47 = vadd.f32 %v5257_v45, %v6642_v36  ;;  %v4127_v49 = vmax.f32 %v4063_v44, 0.0 }
 0x2ad   : > { %v4128_v12 = vmax.f32 %v4064_v46, 0.0 }
 0x2ae   : > { %v4129_v50 = vmax.f32 %v4065_v47, 0.0  ;;  %v3837_v51 = vpop.f32.mrb[4].mxu0 }
 0x2af   : > { %v4190_v52 = vadd.f32 %v4128_v12, %v4126_v48  ;;  %v5258_v53 = vadd.f32 %v3837_v51, %v1667_v63  ;;  %v3839_v54 = vpop.f32.mrb[5].mxu0 }
 0x2b0   : > { %v4227_v55 = vadd.f32 %v4129_v50, %v4127_v49  ;;  %v5259_v56 = vadd.f32 %v3839_v54, %v1669_v0  ;;  %v3841_v57 = vpop.f32.mrb[6].mxu0 }
 0x2b1   : > { %v4066_v58 = vadd.f32 %v5258_v53, %v6640_v34  ;;  %v5260_v59 = vadd.f32 %v3841_v57, %v1671_v1  ;;  %v3843_v60 = vpop.f32.mrb[7].mxu0 }
 0x2b2   : > { %v4067_v61 = vadd.f32 %v5259_v56, %v6642_v36  ;;  %v5261_v62 = vadd.f32 %v3843_v60, %v1673_v2 }
 0x2b3   : > { %v4130_v8 = vmax.f32 %v4066_v58, 0.0  ;;  %v4068_v31 = vadd.f32 %v5260_v59, %v6640_v34 }
 0x2b4   : > { %v4131_v32 = vmax.f32 %v4067_v61, 0.0  ;;  %v4069_v33 = vadd.f32 %v5261_v62, %v6642_v36 }
 0x2b5   : > { %v4191_v35 = vadd.f32 %v4190_v52, %v4130_v8  ;;  %v4132_v37 = vmax.f32 %v4068_v31, 0.0 }
 0x2b6   : > { %v4228_v63 = vadd.f32 %v4227_v55, %v4131_v32  ;;  %v4133_v38 = vmax.f32 %v4069_v33, 0.0  ;;  %v3847_v39 = vpop.f32.mrb[8].mxu0 }
 0x2b7   : > { %v4192_v0 = vadd.f32 %v4191_v35, %v4132_v37  ;;  %v5262_v40 = vadd.f32 %v3847_v39, %v6584_v3  ;;  %v3849_v41 = vpop.f32.mrb[9].mxu0 }
 0x2b8   : > { %v4229_v1 = vadd.f32 %v4228_v63, %v4133_v38  ;;  %v5263_v42 = vadd.f32 %v3849_v41, %v6586_v4  ;;  %v3851_v43 = vpop.f32.mrb[10].mxu0 }
 0x2b9   : > { %v4070_v2 = vadd.f32 %v5262_v40, %v6640_v34  ;;  %v5264_v44 = vadd.f32 %v3851_v43, %v6588_v5  ;;  %v3853_v45 = vpop.f32.mrb[11].mxu0 }
 0x2ba   : > { %v4071_v46 = vadd.f32 %v5263_v42, %v6642_v36  ;;  %v5265_v47 = vadd.f32 %v3853_v45, %v6590_v6 }
 0x2bb   : > { %v4134_v48 = vmax.f32 %v4070_v2, 0.0  ;;  %v4072_v12 = vadd.f32 %v5264_v44, %v6640_v34 }
 0x2bc   : > { %v4135_v49 = vmax.f32 %v4071_v46, 0.0  ;;  %v4073_v3 = vadd.f32 %v5265_v47, %v6642_v36 }
 0x2bd   : > { %v4193_v50 = vadd.f32 %v4192_v0, %v4134_v48  ;;  %v4136_v51 = vmax.f32 %v4072_v12, 0.0 }
 0x2be   : > { %v4230_v52 = vadd.f32 %v4229_v1, %v4135_v49  ;;  %v4137_v4 = vmax.f32 %v4073_v3, 0.0  ;;  %v3857_v53 = vpop.f32.mrb[12].mxu0 }
 0x2bf   : > { %v4194_v54 = vadd.f32 %v4193_v50, %v4136_v51  ;;  %v5266_v55 = vadd.f32 %v3857_v53, %v6592_v7  ;;  %v3859_v5 = vpop.f32.mrb[13].mxu0 }
 0x2c0   : > { %v4231_v56 = vadd.f32 %v4230_v52, %v4137_v4  ;;  %v5267_v57 = vadd.f32 %v3859_v5, %v6594_v9  ;;  %v3861_v58 = vpop.f32.mrb[14].mxu0 }
 0x2c1   : > { %v4074_v6 = vadd.f32 %v5266_v55, %v6640_v34  ;;  %v5268_v59 = vadd.f32 %v3861_v58, %v6596_v10  ;;  %v3863_v60 = vpop.f32.mrb[15].mxu0 }
 0x2c2   : > { %v4075_v61 = vadd.f32 %v5267_v57, %v6642_v36  ;;  %v5269_v62 = vadd.f32 %v3863_v60, %v6598_v11 }
 0x2c3   : > { %v4138_v8 = vmax.f32 %v4074_v6, 0.0  ;;  %v4076_v31 = vadd.f32 %v5268_v59, %v6640_v34 }
 0x2c4   : > { %v4139_v32 = vmax.f32 %v4075_v61, 0.0  ;;  %v4077_v7 = vadd.f32 %v5269_v62, %v6642_v36 }
 0x2c5   : > { %v4195_v33 = vadd.f32 %v4194_v54, %v4138_v8  ;;  %v4140_v35 = vmax.f32 %v4076_v31, 0.0 }
 0x2c6   : > { %v4232_v37 = vadd.f32 %v4231_v56, %v4139_v32  ;;  %v4141_v9 = vmax.f32 %v4077_v7, 0.0  ;;  %v3867_v63 = vpop.f32.mrb[16].mxu0 }
 0x2c7   : > { %v4196_v38 = vadd.f32 %v4195_v33, %v4140_v35  ;;  %v5270_v39 = vadd.f32 %v3867_v63, %v6600_v13  ;;  %v3869_v10 = vpop.f32.mrb[17].mxu0 }
 0x2c8   : > { %v4233_v0 = vadd.f32 %v4232_v37, %v4141_v9  ;;  %v5271_v40 = vadd.f32 %v3869_v10, %v6602_v15  ;;  %v3871_v41 = vpop.f32.mrb[18].mxu0 }
 0x2c9   : > { %v4078_v11 = vadd.f32 %v5270_v39, %v6640_v34  ;;  %v5272_v1 = vadd.f32 %v3871_v41, %v6604_v16  ;;  %v3873_v42 = vpop.f32.mrb[19].mxu0 }
 0x2ca   : > { %v4079_v43 = vadd.f32 %v5271_v40, %v6642_v36  ;;  %v5273_v2 = vadd.f32 %v3873_v42, %v6606_v17 }
 0x2cb   : > { %v4142_v44 = vmax.f32 %v4078_v11, 0.0  ;;  %v4080_v45 = vadd.f32 %v5272_v1, %v6640_v34 }
 0x2cc   : > { %v4143_v46 = vmax.f32 %v4079_v43, 0.0  ;;  %v4081_v13 = vadd.f32 %v5273_v2, %v6642_v36 }
 0x2cd   : > { %v4197_v47 = vadd.f32 %v4196_v38, %v4142_v44  ;;  %v4144_v48 = vmax.f32 %v4080_v45, 0.0 }
 0x2ce   : > { %v4234_v12 = vadd.f32 %v4233_v0, %v4143_v46  ;;  %v4145_v15 = vmax.f32 %v4081_v13, 0.0  ;;  %v3877_v49 = vpop.f32.mrb[20].mxu0 }
 0x2cf   : > { %v4198_v3 = vadd.f32 %v4197_v47, %v4144_v48  ;;  %v5274_v50 = vadd.f32 %v3877_v49, %v6608_v14  ;;  %v3879_v16 = vpop.f32.mrb[21].mxu0 }
 0x2d0   : > { %v4235_v51 = vadd.f32 %v4234_v12, %v4145_v15  ;;  %v5275_v52 = vadd.f32 %v3879_v16, %v6610_v18  ;;  %v3881_v4 = vpop.f32.mrb[22].mxu0 }
 0x2d1   : > { %v4082_v17 = vadd.f32 %v5274_v50, %v6640_v34  ;;  %v5276_v53 = vadd.f32 %v3881_v4, %v6612_v19  ;;  %v3883_v54 = vpop.f32.mrb[23].mxu0 }
 0x2d2   : > { %v4083_v55 = vadd.f32 %v5275_v52, %v6642_v36  ;;  %v5277_v5 = vadd.f32 %v3883_v54, %v6614_v20 }
 0x2d3   : > { %v4146_v56 = vmax.f32 %v4082_v17, 0.0  ;;  %v4084_v57 = vadd.f32 %v5276_v53, %v6640_v34 }
 0x2d4   : > { %v4147_v58 = vmax.f32 %v4083_v55, 0.0  ;;  %v4085_v14 = vadd.f32 %v5277_v5, %v6642_v36 }
 0x2d5   : > { %v4199_v6 = vadd.f32 %v4198_v3, %v4146_v56  ;;  %v4148_v59 = vmax.f32 %v4084_v57, 0.0 }
 0x2d6   : > { %v4236_v60 = vadd.f32 %v4235_v51, %v4147_v58  ;;  %v4149_v18 = vmax.f32 %v4085_v14, 0.0  ;;  %v3887_v61 = vpop.f32.mrb[24].mxu0 }
 0x2d7   : > { %v4200_v62 = vadd.f32 %v4199_v6, %v4148_v59  ;;  %v5278_v8 = vadd.f32 %v3887_v61, %v6616_v21  ;;  %v3889_v19 = vpop.f32.mrb[25].mxu0 }
 0x2d8   : > { %v4237_v31 = vadd.f32 %v4236_v60, %v4149_v18  ;;  %v5279_v32 = vadd.f32 %v3889_v19, %v6618_v22  ;;  %v3891_v7 = vpop.f32.mrb[26].mxu0 }
 0x2d9   : > { %v4086_v20 = vadd.f32 %v5278_v8, %v6640_v34  ;;  %v5280_v33 = vadd.f32 %v3891_v7, %v6620_v23  ;;  %v3893_v35 = vpop.f32.mrb[27].mxu0 }
 0x2da   : > { %v4087_v37 = vadd.f32 %v5279_v32, %v6642_v36  ;;  %v5281_v9 = vadd.f32 %v3893_v35, %v6622_v24 }
 0x2db   : > { %v4150_v63 = vmax.f32 %v4086_v20, 0.0  ;;  %v4088_v38 = vadd.f32 %v5280_v33, %v6640_v34 }
 0x2dc   : > { %v4151_v39 = vmax.f32 %v4087_v37, 0.0  ;;  %v4089_v21 = vadd.f32 %v5281_v9, %v6642_v36 }
 0x2dd   : > { %v4201_v10 = vadd.f32 %v4200_v62, %v4150_v63  ;;  %v4152_v0 = vmax.f32 %v4088_v38, 0.0 }
 0x2de   : > { %v4238_v40 = vadd.f32 %v4237_v31, %v4151_v39  ;;  %v4153_v22 = vmax.f32 %v4089_v21, 0.0  ;;  %v3897_v41 = vpop.f32.mrb[28].mxu0 }
 0x2df   : > { %v4202_v11 = vadd.f32 %v4201_v10, %v4152_v0  ;;  %v5282_v1 = vadd.f32 %v3897_v41, %v6624_v26  ;;  %v3899_v23 = vpop.f32.mrb[29].mxu0 }
 0x2e0   : > { %v4239_v42 = vadd.f32 %v4238_v40, %v4153_v22  ;;  %v5283_v43 = vadd.f32 %v3899_v23, %v6629_v28  ;;  %v3901_v2 = vpop.f32.mrb[30].mxu0 }
 0x2e1   : > { %v4090_v24 = vadd.f32 %v5282_v1, %v6640_v34  ;;  %v5284_v44 = vadd.f32 %v3901_v2, %v6631_v29  ;;  %v3903_v45 = vpop.f32.mrb[31].mxu0 }
 0x2e2   : > { %v4091_v46 = vadd.f32 %v5283_v43, %v6642_v36  ;;  %v5285_v13 = vadd.f32 %v3903_v45, %v6633_v30 }
 0x2e3   : > { %v4154_v47 = vmax.f32 %v4090_v24, 0.0  ;;  %v4092_v48 = vadd.f32 %v5284_v44, %v6640_v34 }
 0x2e4   : > { %v4155_v12 = vmax.f32 %v4091_v46, 0.0  ;;  %v4093_v26 = vadd.f32 %v5285_v13, %v6642_v36 }
 0x2e5   : > { %v4203_v15 = vadd.f32 %v4202_v11, %v4154_v47  ;;  %v4156_v49 = vmax.f32 %v4092_v48, 0.0 }
 0x2e6   : > { %v2171_v3 = vpop.f32.mrb[32].mxu1  ;;  %v4240_v28 = vadd.f32 %v4239_v42, %v4155_v12  ;;  %v4157_v50 = vmax.f32 %v4093_v26, 0.0  ;;  %v3907_v16 = vpop.f32.mrb[32].mxu0 }
 0x2e7   : > { %v2173_v51 = vpop.f32.mrb[33].mxu1  ;;  %v4204_v52 = vadd.f32 %v4203_v15, %v4156_v49  ;;  %v5286_v29 = vadd.f32 %v3907_v16, %v2171_v3  ;;  %v3909_v4 = vpop.f32.mrb[33].mxu0 }
 0x2e8   : > { %v2175_v17 = vpop.f32.mrb[34].mxu1  ;;  %v4241_v53 = vadd.f32 %v4240_v28, %v4157_v50  ;;  %v5287_v54 = vadd.f32 %v3909_v4, %v2173_v51  ;;  %v3911_v30 = vpop.f32.mrb[34].mxu0 }
 0x2e9   : > { %v2177_v55 = vpop.f32.mrb[35].mxu1  ;;  %v4094_v5 = vadd.f32 %v5286_v29, %v6640_v34  ;;  %v5288_v56 = vadd.f32 %v3911_v30, %v2175_v17  ;;  %v3913_v57 = vpop.f32.mrb[35].mxu0 }
 0x2ea   : > { %v4095_v58 = vadd.f32 %v5287_v54, %v6642_v36  ;;  %v5289_v14 = vadd.f32 %v3913_v57, %v2177_v55 }
 0x2eb   : > { %v4158_v6 = vmax.f32 %v4094_v5, 0.0  ;;  %v4096_v59 = vadd.f32 %v5288_v56, %v6640_v34 }
 0x2ec   : > { %v4159_v60 = vmax.f32 %v4095_v58, 0.0  ;;  %v4097_v18 = vadd.f32 %v5289_v14, %v6642_v36 }
 0x2ed   : > { %v4205_v61 = vadd.f32 %v4204_v52, %v4158_v6  ;;  %v4160_v62 = vmax.f32 %v4096_v59, 0.0 }
 0x2ee   : > { %v2181_v8 = vpop.f32.mrb[36].mxu1  ;;  %v4242_v19 = vadd.f32 %v4241_v53, %v4159_v60  ;;  %v4161_v31 = vmax.f32 %v4097_v18, 0.0  ;;  %v3917_v32 = vpop.f32.mrb[36].mxu0 }
 0x2ef   : > { %v2183_v7 = vpop.f32.mrb[37].mxu1  ;;  %v4206_v20 = vadd.f32 %v4205_v61, %v4160_v62  ;;  %v5290_v33 = vadd.f32 %v3917_v32, %v2181_v8  ;;  %v3919_v35 = vpop.f32.mrb[37].mxu0 }
 0x2f0   : > { %v2185_v37 = vpop.f32.mrb[38].mxu1  ;;  %v4243_v9 = vadd.f32 %v4242_v19, %v4161_v31  ;;  %v5291_v63 = vadd.f32 %v3919_v35, %v2183_v7  ;;  %v3921_v38 = vpop.f32.mrb[38].mxu0 }
 0x2f1   : > { %v2187_v39 = vpop.f32.mrb[39].mxu1  ;;  %v4098_v21 = vadd.f32 %v5290_v33, %v6640_v34  ;;  %v5292_v10 = vadd.f32 %v3921_v38, %v2185_v37  ;;  %v3923_v0 = vpop.f32.mrb[39].mxu0 }
 0x2f2   : > { %v4099_v40 = vadd.f32 %v5291_v63, %v6642_v36  ;;  %v5293_v22 = vadd.f32 %v3923_v0, %v2187_v39 }
 0x2f3   : > { %v4162_v41 = vmax.f32 %v4098_v21, 0.0  ;;  %v4100_v11 = vadd.f32 %v5292_v10, %v6640_v34 }
 0x2f4   : > { %v4163_v1 = vmax.f32 %v4099_v40, 0.0  ;;  %v4101_v23 = vadd.f32 %v5293_v22, %v6642_v36 }
 0x2f5   : > { %v4207_v42 = vadd.f32 %v4206_v20, %v4162_v41  ;;  %v4164_v43 = vmax.f32 %v4100_v11, 0.0 }
 0x2f6   : > { %v2191_v2 = vpop.f32.mrb[40].mxu1  ;;  %v4244_v24 = vadd.f32 %v4243_v9, %v4163_v1  ;;  %v4165_v44 = vmax.f32 %v4101_v23, 0.0  ;;  %v3927_v45 = vpop.f32.mrb[40].mxu0 }
 0x2f7   : > { %v2193_v46 = vpop.f32.mrb[41].mxu1  ;;  %v4208_v13 = vadd.f32 %v4207_v42, %v4164_v43  ;;  %v5294_v47 = vadd.f32 %v3927_v45, %v2191_v2  ;;  %v3929_v48 = vpop.f32.mrb[41].mxu0 }
 0x2f8   : > { %v2195_v12 = vpop.f32.mrb[42].mxu1  ;;  %v4245_v26 = vadd.f32 %v4244_v24, %v4165_v44  ;;  %v5295_v15 = vadd.f32 %v3929_v48, %v2193_v46  ;;  %v3931_v49 = vpop.f32.mrb[42].mxu0 }
 0x2f9   : > { %v2197_v3 = vpop.f32.mrb[43].mxu1  ;;  %v4102_v28 = vadd.f32 %v5294_v47, %v6640_v34  ;;  %v5296_v50 = vadd.f32 %v3931_v49, %v2195_v12  ;;  %v3933_v16 = vpop.f32.mrb[43].mxu0 }
 0x2fa   : > { %v4103_v51 = vadd.f32 %v5295_v15, %v6642_v36  ;;  %v5297_v52 = vadd.f32 %v3933_v16, %v2197_v3 }
 0x2fb   : > { %v4166_v29 = vmax.f32 %v4102_v28, 0.0  ;;  %v4104_v4 = vadd.f32 %v5296_v50, %v6640_v34 }
 0x2fc   : > { %v4167_v17 = vmax.f32 %v4103_v51, 0.0  ;;  %v4105_v53 = vadd.f32 %v5297_v52, %v6642_v36 }
 0x2fd   : > { %v4209_v54 = vadd.f32 %v4208_v13, %v4166_v29  ;;  %v4168_v30 = vmax.f32 %v4104_v4, 0.0 }
 0x2fe   : > { %v2201_v55 = vpop.f32.mrb[44].mxu1  ;;  %v4246_v5 = vadd.f32 %v4245_v26, %v4167_v17  ;;  %v4169_v56 = vmax.f32 %v4105_v53, 0.0  ;;  %v3937_v57 = vpop.f32.mrb[44].mxu0 }
 0x2ff   : > { %v2203_v58 = vpop.f32.mrb[45].mxu1  ;;  %v4210_v14 = vadd.f32 %v4209_v54, %v4168_v30  ;;  %v5298_v6 = vadd.f32 %v3937_v57, %v2201_v55  ;;  %v3939_v59 = vpop.f32.mrb[45].mxu0 }
 0x300   : > { %v2205_v60 = vpop.f32.mrb[46].mxu1  ;;  %v4247_v18 = vadd.f32 %v4246_v5, %v4169_v56  ;;  %v5299_v61 = vadd.f32 %v3939_v59, %v2203_v58  ;;  %v3941_v62 = vpop.f32.mrb[46].mxu0 }
 0x301   : > { %v2207_v8 = vpop.f32.mrb[47].mxu1  ;;  %v4106_v19 = vadd.f32 %v5298_v6, %v6640_v34  ;;  %v5300_v31 = vadd.f32 %v3941_v62, %v2205_v60  ;;  %v3943_v32 = vpop.f32.mrb[47].mxu0 }
 0x302   : > { %v4107_v7 = vadd.f32 %v5299_v61, %v6642_v36  ;;  %v5301_v20 = vadd.f32 %v3943_v32, %v2207_v8 }
 0x303   : > { %v4170_v33 = vmax.f32 %v4106_v19, 0.0  ;;  %v4108_v35 = vadd.f32 %v5300_v31, %v6640_v34 }
 0x304   : > { %v4171_v37 = vmax.f32 %v4107_v7, 0.0  ;;  %v4109_v9 = vadd.f32 %v5301_v20, %v6642_v36 }
 0x305   : > { %v4211_v63 = vadd.f32 %v4210_v14, %v4170_v33  ;;  %v4172_v38 = vmax.f32 %v4108_v35, 0.0 }
 0x306   : > { %v2211_v39 = vpop.f32.mrb[48].mxu1  ;;  %v4248_v21 = vadd.f32 %v4247_v18, %v4171_v37  ;;  %v4173_v10 = vmax.f32 %v4109_v9, 0.0  ;;  %v3947_v0 = vpop.f32.mrb[48].mxu0 }
 0x307   : > { %v2213_v40 = vpop.f32.mrb[49].mxu1  ;;  %v4212_v22 = vadd.f32 %v4211_v63, %v4172_v38  ;;  %v5302_v41 = vadd.f32 %v3947_v0, %v2211_v39  ;;  %v3949_v11 = vpop.f32.mrb[49].mxu0 }
 0x308   : > { %v2215_v1 = vpop.f32.mrb[50].mxu1  ;;  %v4249_v23 = vadd.f32 %v4248_v21, %v4173_v10  ;;  %v5303_v42 = vadd.f32 %v3949_v11, %v2213_v40  ;;  %v3951_v43 = vpop.f32.mrb[50].mxu0 }
 0x309   : > { %v2217_v2 = vpop.f32.mrb[51].mxu1  ;;  %v4110_v24 = vadd.f32 %v5302_v41, %v6640_v34  ;;  %v5304_v44 = vadd.f32 %v3951_v43, %v2215_v1  ;;  %v3953_v45 = vpop.f32.mrb[51].mxu0 }
 0x30a   : > { %v4111_v46 = vadd.f32 %v5303_v42, %v6642_v36  ;;  %v5305_v13 = vadd.f32 %v3953_v45, %v2217_v2 }
 0x30b   : > { %v4174_v47 = vmax.f32 %v4110_v24, 0.0  ;;  %v4112_v48 = vadd.f32 %v5304_v44, %v6640_v34 }
 0x30c   : > { %v4175_v12 = vmax.f32 %v4111_v46, 0.0  ;;  %v4113_v26 = vadd.f32 %v5305_v13, %v6642_v36 }
 0x30d   : > { %v4213_v15 = vadd.f32 %v4212_v22, %v4174_v47  ;;  %v4176_v49 = vmax.f32 %v4112_v48, 0.0 }
 0x30e   : > { %v2221_v3 = vpop.f32.mrb[52].mxu1  ;;  %v4250_v28 = vadd.f32 %v4249_v23, %v4175_v12  ;;  %v4177_v50 = vmax.f32 %v4113_v26, 0.0  ;;  %v3957_v16 = vpop.f32.mrb[52].mxu0 }
 0x30f   : > { %v2223_v51 = vpop.f32.mrb[53].mxu1  ;;  %v4214_v52 = vadd.f32 %v4213_v15, %v4176_v49  ;;  %v5306_v29 = vadd.f32 %v3957_v16, %v2221_v3  ;;  %v3959_v4 = vpop.f32.mrb[53].mxu0 }
 0x310   : > { %v2225_v17 = vpop.f32.mrb[54].mxu1  ;;  %v4251_v53 = vadd.f32 %v4250_v28, %v4177_v50  ;;  %v5307_v54 = vadd.f32 %v3959_v4, %v2223_v51  ;;  %v3961_v30 = vpop.f32.mrb[54].mxu0 }
 0x311   : > { %v2227_v55 = vpop.f32.mrb[55].mxu1  ;;  %v4114_v5 = vadd.f32 %v5306_v29, %v6640_v34  ;;  %v5308_v56 = vadd.f32 %v3961_v30, %v2225_v17  ;;  %v3963_v57 = vpop.f32.mrb[55].mxu0 }
 0x312   : > { %v4115_v58 = vadd.f32 %v5307_v54, %v6642_v36  ;;  %v5309_v14 = vadd.f32 %v3963_v57, %v2227_v55 }
 0x313   : > { %v4178_v6 = vmax.f32 %v4114_v5, 0.0  ;;  %v4116_v59 = vadd.f32 %v5308_v56, %v6640_v34 }
 0x314   : > { %v4179_v60 = vmax.f32 %v4115_v58, 0.0  ;;  %v4117_v18 = vadd.f32 %v5309_v14, %v6642_v36 }
 0x315   : > { %v4215_v61 = vadd.f32 %v4214_v52, %v4178_v6  ;;  %v4180_v62 = vmax.f32 %v4116_v59, 0.0 }
 0x316   : > { %v2231_v8 = vpop.f32.mrb[56].mxu1  ;;  %v4252_v19 = vadd.f32 %v4251_v53, %v4179_v60  ;;  %v4181_v31 = vmax.f32 %v4117_v18, 0.0  ;;  %v3967_v32 = vpop.f32.mrb[56].mxu0 }
 0x317   : > { %v2233_v7 = vpop.f32.mrb[57].mxu1  ;;  %v4216_v20 = vadd.f32 %v4215_v61, %v4180_v62  ;;  %v5310_v33 = vadd.f32 %v3967_v32, %v2231_v8  ;;  %v3969_v35 = vpop.f32.mrb[57].mxu0  ;;  %v6012_v61 = vmov 1966171168  }
 0x318   : > { %v2235_v37 = vpop.f32.mrb[58].mxu1  ;;  %v4253_v9 = vadd.f32 %v4252_v19, %v4181_v31  ;;  %v5311_v63 = vadd.f32 %v3969_v35, %v2233_v7  ;;  %v3971_v38 = vpop.f32.mrb[58].mxu0  ;;  %v4271_v62 = vunpack.c.l.s4 %v6012_v61 }
 0x319   : > { %v2237_v39 = vpop.f32.mrb[59].mxu1  ;;  %v4118_v21 = vadd.f32 %v5310_v33, %v6640_v34  ;;  %v5312_v10 = vadd.f32 %v3971_v38, %v2235_v37  ;;  %v3973_v0 = vpop.f32.mrb[59].mxu0  ;;  %v5948_v38 = vld [vmem:[%s6882_s3 + $0x40] sm:$0xff] (!%p5207_p4)  }
 0x31a   : > { %v4119_v40 = vadd.f32 %v5311_v63, %v6642_v36  ;;  %v5313_v22 = vadd.f32 %v3973_v0, %v2237_v39  ;;  %v4272_v31 = vunpack.c.0.s8 %v4271_v62  ;;  %v5949_v39 = vld [vmem:[%s6882_s3] sm:$0xff] (!%p5207_p4)   ;;  %5230 = vmatprep.subr.bf16.mxu0 (!%p5207_p4), %v5948_v38  ;;  %v5953_v0 = vld [vmem:[%s6882_s3 + $0x10] sm:$0xff] (!%p5207_p4)  }
 0x31b   : > { %v4182_v41 = vmax.f32 %v4118_v21, 0.0  ;;  %v4120_v11 = vadd.f32 %v5312_v10, %v6640_v34  ;;  %v5950_v21 = vld [vmem:[%s6882_s3 + $0x48] sm:$0xff] (!%p5207_p4)   ;;  %5231 = vmatpush3.bf16.msra.mxu0 (!%p5207_p4), %v5949_v39  ;;  %v5952_v10 = vld [vmem:[%s6882_s3 + $0x50] sm:$0xff] (!%p5207_p4)  }
 0x31c   : > { %v4183_v1 = vmax.f32 %v4119_v40, 0.0  ;;  %v4121_v23 = vadd.f32 %v5313_v22, %v6642_v36  ;;  %v4275_v35 = vsub.s32 %v4272_v31, %v6627_v27  ;;  %5232 = vmatprep.subr.bf16.mxu0 (!%p5207_p4), %v5950_v21  ;;  %v5954_v40 = vld [vmem:[%s6882_s3 + $0x58] sm:$0xff] (!%p5207_p4)  }
 0x31d   : > { %v4217_v42 = vadd.f32 %v4216_v20, %v4182_v41  ;;  %v4184_v43 = vmax.f32 %v4120_v11, 0.0  ;;  %v5955_v22 = vld [vmem:[%s6882_s3 + $0x18] sm:$0xff] (!%p5207_p4)   ;;  %v5956_v41 = vld [vmem:[%s6882_s3 + $0x60] sm:$0xff] (!%p5207_p4)  }
 0x31e   : > { %v2241_v2 = vpop.f32.mrb[60].mxu1  ;;  %v4254_v24 = vadd.f32 %v4253_v9, %v4183_v1  ;;  %v4185_v44 = vmax.f32 %v4121_v23, 0.0  ;;  %v3977_v45 = vpop.f32.mrb[60].mxu0  ;;  %v5957_v11 = vld [vmem:[%s6882_s3 + $0x20] sm:$0xff] (!%p5207_p4)   ;;  %v5958_v1 = vld [vmem:[%s6882_s3 + $0x68] sm:$0xff] (!%p5207_p4)  }
 0x31f   : > { %v2243_v46 = vpop.f32.mrb[61].mxu1  ;;  %v4218_v13 = vadd.f32 %v4217_v42, %v4184_v43  ;;  %v5314_v47 = vadd.f32 %v3977_v45, %v2241_v2  ;;  %v3979_v48 = vpop.f32.mrb[61].mxu0  ;;  %5233 = vmatpush3.bf16.msra.mxu0 (!%p5207_p4), %v5951_v25  ;;  %v5959_v43 = vld [vmem:[%s6882_s3 + $0x28] sm:$0xff] (!%p5207_p4)   ;;  %v5960_v2 = vld [vmem:[%s6882_s3 + $0x70] sm:$0xff] (!%p5207_p4)   ;;  %v5963_v45 = vld [vmem:[%s6882_s3 + $0x38] sm:$0xff] (!%p5207_p4)  }
 0x320   : > { %v2245_v12 = vpop.f32.mrb[62].mxu1  ;;  %v4255_v26 = vadd.f32 %v4254_v24, %v4185_v44  ;;  %v5315_v15 = vadd.f32 %v3979_v48, %v2243_v46  ;;  %v3981_v49 = vpop.f32.mrb[62].mxu0  ;;  %5234 = vmatprep.subr.bf16.mxu0 (!%p5207_p4), %v5952_v10  ;;  %v5961_v24 = vld [vmem:[%s6882_s3 + $0x30] sm:$0xff] (!%p5207_p4)   ;;  %v5962_v44 = vld [vmem:[%s6882_s3 + $0x78] sm:$0xff] (!%p5207_p4)  }
 0x321   : > { %v2247_v3 = vpop.f32.mrb[63].mxu1  ;;  %v4122_v28 = vadd.f32 %v5314_v47, %v6640_v34  ;;  %v5316_v50 = vadd.f32 %v3981_v49, %v2245_v12  ;;  %v3983_v16 = vpop.f32.mrb[63].mxu0  ;;  %v6786_v47 = vand.u32 (!%p5207_p4), 3, %v6627_v27  ;;  %v5208_v12 = vld [vmem:[%s6883_s4] ss:$0 sm:$0xff] (!%p5207_p4) }
 0x322   : > { %v4123_v51 = vadd.f32 %v5315_v15, %v6642_v36  ;;  %v5317_v52 = vadd.f32 %v3983_v16, %v2247_v3 }
 0x323   : > { %v4186_v29 = vmax.f32 %v4122_v28, 0.0  ;;  %v4124_v4 = vadd.f32 %v5316_v50, %v6640_v34  ;;  %5235 = vmatpush3.bf16.msra.mxu0 (!%p5207_p4), %v5953_v0  ;;  %vm4532_vm4 = vcmp.eq.s32.totalorder (!%p5207_p4), %v6786_v47, 1  ;;  %vm4496_vm5 = vcmp.eq.s32.totalorder (!%p5207_p4), %v6786_v47, 0 }
 0x324   : > { %v4187_v17 = vmax.f32 %v4123_v51, 0.0  ;;  %v4125_v53 = vadd.f32 %v5317_v52, %v6642_v36  ;;  %5236 = vmatprep.subr.bf16.mxu0 (!%p5207_p4), %v5954_v40  ;;  %vm4567_vm7 = vcmp.eq.s32.totalorder (!%p5207_p4), %v6786_v47, 2  ;;  %vm4602_vm8 = vcmp.eq.s32.totalorder (!%p5207_p4), %v6786_v47, 3 }
 0x325   : > { %v4219_v54 = vadd.f32 %v4218_v13, %v4186_v29  ;;  %v4188_v30 = vmax.f32 %v4124_v4, 0.0 }
 0x326   : > { %v4256_v55 = vadd.f32 %v4255_v26, %v4187_v17  ;;  %v4189_v5 = vmax.f32 %v4125_v53, 0.0 }
 0x327   : > { %v4220_v56 = vadd.f32 %v4219_v54, %v4188_v30  ;;  %5237 = vmatpush3.bf16.msra.mxu0 (!%p5207_p4), %v5955_v22 }
 0x328   : > { %v4257_v57 = vadd.f32 %v4256_v55, %v4189_v5  ;;  %5238 = vmatprep.subr.bf16.mxu0 (!%p5207_p4), %v5956_v41 }
 0x329   : > { %v4221_v58 = vrot.slane %v4220_v56, 4 }
 0x32a   : > { %v4258_v14 = vrot.slane %v4257_v57, 4 }
 0x32b   : > { %v4222_v6 = vadd.f32 %v4221_v58, %v4220_v56  ;;  %5239 = vmatpush3.bf16.msra.mxu0 (!%p5207_p4), %v5957_v11 }
 0x32c   : > { %v4259_v59 = vadd.f32 %v4258_v14, %v4257_v57  ;;  %5240 = vmatprep.subr.bf16.mxu0 (!%p5207_p4), %v5958_v1 }
 0x32d   : > { %v4223_v60 = vrot.slane %v4222_v6, 2 }
 0x32e   : > { %v4260_v18 = vrot.slane %v4259_v59, 2 }
 0x32f   : > { %v4224_v34 = vadd.f32 %v4223_v60, %v4222_v6  ;;  %5241 = vmatpush3.bf16.msra.mxu0 (!%p5207_p4), %v5959_v43 }
 0x330   : > { %v4261_v8 = vadd.f32 %v4260_v18, %v4259_v59  ;;  %5242 = vmatprep.subr.bf16.mxu0 (!%p5207_p4), %v5960_v2 }
 0x331   : > { %v4225_v19 = vrot.slane %v4224_v34, 1 }
 0x332   : > { %v4262_v36 = vrot.slane %v4261_v8, 1 }
 0x333   : > { %v4226_v32 = vadd.f32 %v4225_v19, %v4224_v34  ;;  %5243 = vmatpush3.bf16.msra.mxu0 (!%p5207_p4), %v5961_v24 }
 0x334   : > { %v4263_v7 = vadd.f32 %v4262_v36, %v4261_v8  ;;  %5244 = vmatprep.subr.bf16.mxu0 (!%p5207_p4), %v5962_v44 }
 0x335   : > { %v4265_v20 = vmul.f32 0.00390625, %v4226_v32 }
 0x336   : > { %v4266_v33 = vmul.f32 0.00390625, %v4263_v7 }
 0x337   : > { %5245 = vmatpush3.bf16.msra.mxu0 (!%p5207_p4), %v5963_v45 }
 0x338   : > { %v4269_v37 = vcombine.low %v4265_v20, %v4266_v33  ;;  %4302 = sbr.rel (%p5207_p4) target bundleno = 2143 (0x85f), region = 52 }
 0x33a   : > { %v4276_v9 = vrot.slane %v4269_v37, %v4275_v35 }
 0x33c   : > { %v4283_v63 = vrot.slane %v4276_v9, %v4275_v35 }
 0x33e   : > { %4297 = vst.msk [vmem:[%s4296_s11] ss:$8 sm:$0x3] %vm4287_vm3, %v4283_v63 }
 0x345   : > { %v4304_v23 = vld [vmem:[#allocation2 + $0x8] sm:$0xff]  ;;  %v4303_v46 = vld [vmem:[#allocation2] sm:$0xff] }
 0x346   : > { %v4306_v42 = vpack.c.bf16 %v4304_v23, %v4304_v23  ;;  %v4305_v13 = vpack.c.bf16 %v4303_v46, %v4303_v46 }
 0x348   : > { %4474 = vmatprep.mubr.bf16.mxu0 %v4306_v42 }
 0x349   : > { %4475 = vmatmul.mubr.bf16.vlgmr.msra.gmra.mrb[0].mxu0 %v4305_v13 }
 0x41c   : > { %v5246_v48 = vpop.f32.mrb[0].mxu0 }
 0x41d   : > { %v5247_v26 = vpop.f32.mrb[1].mxu0 }
 0x41e   : > { %v5248_v15 = vadd.f32 %v5247_v26, %v5246_v48  ;;  %v5249_v49 = vpop.f32.mrb[2].mxu0 }
 0x41f   : > { %v5250_v3 = vpop.f32.mrb[3].mxu0 }
 0x420   : > { %v6793_v28 = vadd.f32 %v5248_v15, %v5208_v12 }
 0x422   : > { %v4535_v27 = vsel %vm4532_vm4, %v6793_v28, 0.0  ;;  %v4499_v50 = vsel %vm4496_vm5, %v6793_v28, 0.0  ;;  %v4570_v6 = vsel %vm4567_vm7, %v6793_v28, 0.0  ;;  %v4605_v60 = vsel %vm4602_vm8, %v6793_v28, 0.0 }
 0x423   : > { %v4536_v16 = vsel %vm4500_vm6, %v4535_v27, 0.0  ;;  %v4501_v51 = vsel %vm4500_vm6, %v4499_v50, 0.0  ;;  %v4571_v59 = vsel %vm4500_vm6, %v4570_v6, 0.0  ;;  %v4606_v18 = vsel %vm4500_vm6, %v4605_v60, 0.0 }
 0x424   : > { %4537 = vadd.xlane.f32.xlu1 %v4536_v16  ;;  %4502 = vadd.xlane.f32.xlu0 %v4501_v51 }
 0x4b1   : > { %v4503_v52 = vpop.xlane.xlu0 %4502  ;;  %v4538_v61 = vpop.xlane.xlu1 %4537 }
 0x4b2   : > { %v4504_v29 = vrot.slane %v4503_v52, 4  ;;  %v4539_v62 = vrot.slane %v4538_v61, 4 }
 0x4b4   : > { %v4505_v4 = vadd.f32 %v4504_v29, %v4503_v52  ;;  %v4540_v34 = vadd.f32 %v4539_v62, %v4538_v61 }
 0x4b6   : > { %v4506_v17 = vrot.slane %v4505_v4, 2  ;;  %v4541_v8 = vrot.slane %v4540_v34, 2 }
 0x4b8   : > { %v4507_v53 = vadd.f32 %v4506_v17, %v4505_v4  ;;  %v4542_v32 = vadd.f32 %v4541_v8, %v4540_v34 }
 0x4ba   : > { %v4508_v54 = vrot.slane %v4507_v53, 1  ;;  %v4543_v33 = vrot.slane %v4542_v32, 1 }
 0x4bc   : > { %v4509_v30 = vadd.f32 %v4508_v54, %v4507_v53  ;;  %v4544_v9 = vadd.f32 %v4543_v33, %v4542_v32 }
 0x4be   : > { %5767 = vpush %v4509_v30 }
 0x4ef   : > { %s5768_s27 = spop %5767 }
 0x4f0   : > { %v4511_v55 = vstv %s5768_s27 }
 0x4f1   : > { %v4512_v5 = vmul.f32 0.015625, %v4511_v55 }
 0x4f3   : > { %v4513_v56 = vsub.f32 %v6793_v28, %v4512_v5  ;;  %v4528_v39 = vsel %vm4496_vm5, %v4512_v5, 0.0  ;;  %v4639_v5 = vld [vmem:[%s6884_s5] sm:$0xff] }
 0x4f5   : > { %v4514_v57 = vmul.f32 %v4513_v56, %v4513_v56  ;;  %v6013_v56 = vmov 0  }
 0x4f6   : > { %5946 = vset.pattern.permute.xlu0 %v6013_v56  ;;  %5947 = vset.pattern.permute.xlu1 %v6013_v56 }
 0x4f7   : > { %v4515_v58 = vsel %vm4496_vm5, %v4514_v57, 0.0 }
 0x4f8   : > { %v4516_v14 = vsel %vm4500_vm6, %v4515_v58, 0.0 }
 0x4f9   : > { %4517 = vadd.xlane.f32.xlu0 %v4516_v14 }
 0x4fd   : > { %4572 = vadd.xlane.f32.xlu0 %v4571_v59 }
 0x501   : > { %4607 = vadd.xlane.f32.xlu0 %v4606_v18 }
 0x517   : > { %4642 = vperm.xlu0 %5946, %v4639_v5  }
 0x586   : > { %v4518_v19 = vpop.xlane.xlu0 %4517 }
 0x587   : > { %v4519_v36 = vrot.slane %v4518_v19, 4 }
 0x589   : > { %v4520_v31 = vadd.f32 %v4519_v36, %v4518_v19 }
 0x58a   : > { %v4573_v22 = vpop.xlane.xlu0 %4572 }
 0x58b   : > { %v4521_v7 = vrot.slane %v4520_v31, 2  ;;  %v4574_v41 = vrot.slane %v4573_v22, 4 }
 0x58d   : > { %v4522_v20 = vadd.f32 %v4521_v7, %v4520_v31  ;;  %v4575_v11 = vadd.f32 %v4574_v41, %v4573_v22 }
 0x58e   : > { %v4608_v57 = vpop.xlane.xlu0 %4607 }
 0x58f   : > { %v4523_v35 = vrot.slane %v4522_v20, 1  ;;  %v4576_v1 = vrot.slane %v4575_v11, 2  ;;  %v4609_v58 = vrot.slane %v4608_v57, 4 }
 0x591   : > { %v4524_v37 = vadd.f32 %v4523_v35, %v4522_v20  ;;  %v4577_v2 = vadd.f32 %v4576_v1, %v4575_v11  ;;  %v4610_v14 = vadd.f32 %v4609_v58, %v4608_v57 }
 0x593   : > { %5769 = vpush %v4524_v37  ;;  %v4578_v45 = vrot.slane %v4577_v2, 1  ;;  %v4611_v6 = vrot.slane %v4610_v14, 2 }
 0x594   : > { %5771 = vpush %v4544_v9 }
 0x595   : > { %v4579_v48 = vadd.f32 %v4578_v45, %v4577_v2  ;;  %v4612_v61 = vadd.f32 %v4611_v6, %v4610_v14 }
 0x597   : > { %v4613_v8 = vrot.slane %v4612_v61, 1 }
 0x599   : > { %v4614_v31 = vadd.f32 %v4613_v8, %v4612_v61 }
 0x5c4   : > { %s5770_s28 = spop %5769 }
 0x5c5   : > { %s5772_s29 = spop %5771  ;;  %v4526_v12 = vstv %s5770_s28 }
 0x5c6   : > { %v4546_v63 = vstv %s5772_s29  ;;  %v4527_v26 = vmul.f32 0.015625, %v4526_v12 }
 0x5c7   : > { %v4547_v38 = vmul.f32 0.015625, %v4546_v63 }
 0x5c8   : > { %v4529_v15 = vadd.f32 1e-05, %v4527_v26 }
 0x5c9   : > { %v4548_v21 = vsub.f32 %v6793_v28, %v4547_v38  ;;  %v4563_v25 = vsel %vm4532_vm4, %v4547_v38, %v4528_v39 }
 0x5ca   : > { %5964 = vrsqrt.f32 %v4529_v15 }
 0x5cb   : > { %v4549_v10 = vmul.f32 %v4548_v21, %v4548_v21 }
 0x5cd   : > { %v4550_v0 = vsel %vm4532_vm4, %v4549_v10, 0.0  ;;  %v4646_v10 = vld [vmem:[%s6885_s6] sm:$0xff] }
 0x5ce   : > { %v4551_v40 = vsel %vm4500_vm6, %v4550_v0, 0.0 }
 0x5cf   : > { %4552 = vadd.xlane.f32.xlu1 %v4551_v40 }
 0x5d4   : > { %v5965_v53 = vpop.eup %5964 }
 0x5d5   : > { %v4531_v30 = vsel %vm4496_vm5, %v5965_v53, 0.0 }
 0x65c   : > { %v4553_v23 = vpop.xlane.xlu1 %4552 }
 0x65d   : > { %v4554_v42 = vrot.slane %v4553_v23, 4 }
 0x65f   : > { %v4555_v43 = vadd.f32 %v4554_v42, %v4553_v23 }
 0x661   : > { %v4556_v24 = vrot.slane %v4555_v43, 2 }
 0x663   : > { %v4557_v44 = vadd.f32 %v4556_v24, %v4555_v43 }
 0x665   : > { %v4558_v46 = vrot.slane %v4557_v44, 1 }
 0x667   : > { %v4559_v13 = vadd.f32 %v4558_v46, %v4557_v44  ;;  %v4643_v46 = vpop.permute.xlu0 %4642 }
 0x669   : > { %5773 = vpush %v4559_v13 }
 0x66a   : > { %5775 = vpush %v4579_v48 }
 0x69a   : > { %s5774_s30 = spop %5773 }
 0x69b   : > { %v4561_v49 = vstv %s5774_s30  ;;  %s5776_s8 = spop %5775 }
 0x69c   : > { %v4562_v3 = vmul.f32 0.015625, %v4561_v49  ;;  %v4581_v27 = vstv %s5776_s8 }
 0x69d   : > { %v4582_v50 = vmul.f32 0.015625, %v4581_v27 }
 0x69e   : > { %v4564_v16 = vadd.f32 1e-05, %v4562_v3 }
 0x69f   : > { %v4583_v51 = vsub.f32 %v6793_v28, %v4582_v50  ;;  %v4598_v52 = vsel %vm4567_vm7, %v4582_v50, %v4563_v25 }
 0x6a0   : > { %5966 = vrsqrt.f32 %v4564_v16 }
 0x6a1   : > { %v4584_v29 = vmul.f32 %v4583_v51, %v4583_v51 }
 0x6a3   : > { %v4585_v4 = vsel %vm4567_vm7, %v4584_v29, 0.0 }
 0x6a4   : > { %v4586_v17 = vsel %vm4500_vm6, %v4585_v4, 0.0 }
 0x6a5   : > { %4587 = vadd.xlane.f32.xlu1 %v4586_v17 }
 0x6aa   : > { %v5967_v54 = vpop.eup %5966 }
 0x6ab   : > { %v4566_v55 = vsel %vm4532_vm4, %v5967_v54, %v4531_v30 }
 0x732   : > { %v4588_v59 = vpop.xlane.xlu1 %4587 }
 0x733   : > { %v4589_v60 = vrot.slane %v4588_v59, 4 }
 0x735   : > { %v4590_v18 = vadd.f32 %v4589_v60, %v4588_v59 }
 0x737   : > { %v4591_v62 = vrot.slane %v4590_v18, 2 }
 0x739   : > { %v4592_v34 = vadd.f32 %v4591_v62, %v4590_v18 }
 0x73b   : > { %v4593_v19 = vrot.slane %v4592_v34, 1 }
 0x73d   : > { %v4594_v36 = vadd.f32 %v4593_v19, %v4592_v34 }
 0x73f   : > { %5777 = vpush %v4594_v36 }
 0x740   : > { %5779 = vpush %v4614_v31 }
 0x770   : > { %s5778_s11 = spop %5777 }
 0x771   : > { %v4596_v32 = vstv %s5778_s11  ;;  %s5780_s12 = spop %5779 }
 0x772   : > { %v4597_v7 = vmul.f32 0.015625, %v4596_v32  ;;  %v4616_v20 = vstv %s5780_s12 }
 0x773   : > { %v4617_v33 = vmul.f32 0.015625, %v4616_v20 }
 0x774   : > { %v4599_v35 = vadd.f32 1e-05, %v4597_v7 }
 0x775   : > { %v4618_v37 = vsub.f32 %v6793_v28, %v4617_v33  ;;  %v4633_v9 = vsel %vm4602_vm8, %v4617_v33, %v4598_v52 }
 0x776   : > { %5968 = vrsqrt.f32 %v4599_v35  ;;  %v4637_v44 = vsub.f32 %v6793_v28, %v4633_v9 }
 0x777   : > { %v4619_v63 = vmul.f32 %v4618_v37, %v4618_v37 }
 0x779   : > { %v4620_v38 = vsel %vm4602_vm8, %v4619_v63, 0.0 }
 0x77a   : > { %v4621_v39 = vsel %vm4500_vm6, %v4620_v38, 0.0 }
 0x77b   : > { %4622 = vadd.xlane.f32.xlu1 %v4621_v39 }
 0x780   : > { %v5969_v21 = vpop.eup %5968 }
 0x781   : > { %v4601_v25 = vsel %vm4567_vm7, %v5969_v21, %v4566_v55 }
 0x78c   : > { %4649 = vperm.xlu1 %5947, %v4646_v10  }
 0x808   : > { %v4623_v0 = vpop.xlane.xlu1 %4622 }
 0x809   : > { %v4624_v40 = vrot.slane %v4623_v0, 4 }
 0x80b   : > { %v4625_v22 = vadd.f32 %v4624_v40, %v4623_v0 }
 0x80c   : > { %v4650_v48 = vpop.permute.xlu1 %4649 }
 0x80d   : > { %v4626_v41 = vrot.slane %v4625_v22, 2 }
 0x80f   : > { %v4627_v11 = vadd.f32 %v4626_v41, %v4625_v22 }
 0x811   : > { %v4628_v1 = vrot.slane %v4627_v11, 1 }
 0x813   : > { %v4629_v23 = vadd.f32 %v4628_v1, %v4627_v11 }
 0x815   : > { %5781 = vpush %v4629_v23 }
 0x846   : > { %s5782_s15 = spop %5781 }
 0x847   : > { %v4631_v42 = vstv %s5782_s15 }
 0x848   : > { %v4632_v43 = vmul.f32 0.015625, %v4631_v42 }
 0x84a   : > { %v4634_v2 = vadd.f32 1e-05, %v4632_v43 }
 0x84c   : > { %5970 = vrsqrt.f32 %v4634_v2 }
 0x856   : > { %v5971_v24 = vpop.eup %5970 }
 0x857   : > { %v4636_v45 = vsel %vm4602_vm8, %v5971_v24, %v4601_v25 }
 0x858   : > { %v4638_v13 = vmul.f32 %v4637_v44, %v4636_v45 }
 0x85a   : > { %v4645_v12 = vmul.f32 %v4643_v46, %v4638_v13 }
 0x85c   : > { %v4652_v26 = vadd.f32 %v4650_v48, %v4645_v12 }
 0x85e   : > { %4653 = vst.msk [vmem:[#allocation3] sm:$0xff] %vm4500_vm6, %v4652_v26 }
 0x85f PF: > { %p5787_p5 = scmp.eq.s32.totalorder %s6061_s25, 7  ;;  %s6014_s16 = smov [#allocation3]  }
 0x860   : > { %s4661_s17 = sshll.u32 %s6014_s16, 4  ;;  %s4662_s17 = int_to_ptr.vmem [resolvable:$true] %s4661_s17 }
 0x861   : > { %s5972_s18 = scalar_lea.vmem %s4662_s17, 128  ;;  %p5979_p9 = scmp.lt.s32.totalorder %s4662_s17, %s4662_s17 }
 0x862   : > { %p5973_p6 = scmp.ne.s32.totalorder %s4662_s17, %s5972_s18  ;;  %p5980_p10 = scmp.lt.s32.totalorder %s5972_s18, %s5972_s18 }
 0x864   : > { %p5974_p7 = pnand %p5973_p6, %p5787_p5  ;;  %p5981_p11 = por %p5980_p10, %p5979_p9 }
 0x866   : > { %p5975_p8 = pneg %p5974_p7 }
 0x868   : > { %p5982_p12 = pnand %p5981_p11, %p5975_p8 }
 0x86a   : > { %5985 = shalt.err (!%p5982_p12)
}
 0x86b   : > { %s5986_s21 = scalar_lea.hbm %s6886_s7, 128 }
 0x86c   : > { %p5987_p13 = scmp.ne.s32.totalorder %s6886_s7, %s5986_s21  ;;  %p5992_p2 = scmp.lt.u32.totalorder %s5986_s21, %s6886_s7 }
 0x86e   : > { %p5988_p0 = pnand %p5987_p13, %p5787_p5 }
 0x870   : > { %p5989_p1 = pneg %p5988_p0 }
 0x872   : > { %p5994_p3 = pnand %p5992_p2, %p5989_p1 }
 0x874   : > { %5997 = shalt.err (!%p5994_p3)
}
 0x875   : > { %5784 = dma.vmem_to_hbm [thread:$0]  (%p5787_p5), %s4662_s17, 128, %s6886_s7, [#allocation4]  }
 0x876   : > { %6003 = dma.done.wait (%p5787_p5), [#allocation4], 128  }
 0x877   : > { %6005 = vsyncadd (%p5787_p5), [#allocation4], 4294967168 }
 0x878 PF: > { %s18_s24 = sadd.s32 1, %s6008_s24  }
 0x879   : > { %p15_p4 = scmp.ge.s32.totalorder %s18_s24, 10  }
 0x87b   :  { %17 = sbr.rel (!%p15_p4) target bundleno = 1 (0x1), region = 90 }
 0x882   :  { %4674 = vsyncpa [#allocation4], 1 }
 0x883   :  { %4676 = vsyncpa [#allocation4 + $0x1], 1 }

</bundles_post_ra>
